<compile_context>
chip_gen: v6e
topology: v6e:2x2x1
jax: 0.10.0
libtpu: 0.0.40
codegen_flags: <defaults>
</compile_context>

<pallas_src>
import functools

import jax
import jax.numpy as jnp
from jax import lax
from jax.experimental import pallas as pl
from jax.experimental.pallas import tpu as pltpu


def _lstm_classifier_kernel(x0_ref, w_ref, fc_ref, out_ref, *,
                            T, B, E, H, C, num_layers, layer_offs, fc_offs):
    """Inputs:
         x0_ref : (T*B, 2E)  row block t = [embed(t) | embed(T-1-t)] (time-major)
         w_ref  : (rows, 8H) packed fused LSTM weights (see _pack_lstm_weights)
         fc_ref : (E+2H+8, C) packed FC weight + bias
       Output:
         out_ref: (B, C) softmax probabilities
    """
    H2, H4, H6, H8 = 2 * H, 4 * H, 6 * H, 8 * H

    # Lane mask marking the g-gate columns (fused layout: blocks 4,5 of width H).
    lane = lax.broadcasted_iota(jnp.int32, (B, H8), 1)
    g_mask = (lane >= H4) & (lane < H6)

    x2d = x0_ref[...]                    # (T*B, 2*in_dim), fused [x(t) | x(T-1-t)]

    pooled = None
    for layer in range(num_layers):
        in2, wc_off, hh_off, b_off = layer_offs[layer]
        is_last = layer == num_layers - 1
        w_cat = w_ref[wc_off:wc_off + in2, :]          # (2*in_dim, 8H)
        w_hh = w_ref[hh_off:hh_off + H2, :]            # (2H, 8H)
        b = w_ref[b_off:b_off + 1, :]                  # (1, 8H)

        # Hoisted fused input projection for all timesteps & BOTH directions:
        # one MXU matmul per layer, bias folded in.  Row block s holds the gate
        # inputs for forward time s and backward time T-1-s.
        gin_all = jnp.dot(x2d, w_cat, preferred_element_type=jnp.float32) + b

        h = jnp.zeros((B, H2), jnp.float32)            # [h_fwd(s) | h_bwd(T-1-s)]
        c = jnp.zeros((B, H2), jnp.float32)
        if is_last:
            pooled = jnp.zeros((B, H2), jnp.float32)
        else:
            hf = [None] * T                            # forward hidden at time t
            hb = [None] * T                            # backward hidden at time t

        # Fully unrolled fused recurrence: one dot + one tanh pass per step.
        for s in range(T):
            gates = (gin_all[s * B:(s + 1) * B, :]
                     + jnp.dot(h, w_hh, preferred_element_type=jnp.float32))
            # sigmoid(x) = 0.5*tanh(0.5*x) + 0.5  ->  single tanh over all 8H lanes
            gs = jnp.where(g_mask, gates, 0.5 * gates)
            t_all = jnp.tanh(gs)
            act = jnp.where(g_mask, t_all, 0.5 * t_all + 0.5)
            i_g = act[:, 0:H2]
            f_g = act[:, H2:H4]
            g_g = act[:, H4:H6]
            o_g = act[:, H6:H8]
            c = f_g * c + i_g * g_g
            h = o_g * jnp.tanh(c)
            if is_last:
                # Running max over time; ReLU folded in via the 0 init.
                pooled = jnp.maximum(pooled, h)
            else:
                hf[s] = h[:, 0:H]
                hb[T - 1 - s] = h[:, H:H2]

        if not is_last:
            # Next layer's fused input: row block t = [y(t) | y(T-1-t)] with
            # y(t) = [h_fwd(t) | h_bwd(t)].  Assembled from live values; no
            # scratch round-trip needed.
            x2d = jnp.concatenate(
                [jnp.concatenate([hf[t], hb[t], hf[T - 1 - t], hb[T - 1 - t]],
                                 axis=-1) for t in range(T)],
                axis=0)                                # (T*B, 4H)

    # ---- epilogue: pooled embed features (pairwise-max tree), Linear, Softmax
    emb = x0_ref[:, 0:E]                               # (T*B, E), time-major
    blocks = [emb[t * B:(t + 1) * B, :] for t in range(T)]
    while len(blocks) > 1:
        nxt = [jnp.maximum(blocks[i], blocks[i + 1])
               for i in range(0, len(blocks) - 1, 2)]
        if len(blocks) % 2:
            nxt.append(blocks[-1])
        blocks = nxt
    pooled_emb = jnp.maximum(blocks[0], 0.0)           # relu(max_t embed)

    we_off, wl_off, fb_off = fc_offs
    fc_we = fc_ref[we_off:we_off + E, :]               # (E, C)
    fc_wl = fc_ref[wl_off:wl_off + H2, :]              # (2H, C)
    fc_b = fc_ref[fb_off:fb_off + 1, :]                # (1, C)
    logits = (jnp.dot(pooled_emb, fc_we, preferred_element_type=jnp.float32)
              + jnp.dot(pooled, fc_wl, preferred_element_type=jnp.float32)
              + fc_b)
    logits = logits - jnp.max(logits, axis=1, keepdims=True)
    e = jnp.exp(logits)
    out_ref[...] = e / jnp.sum(e, axis=1, keepdims=True)   # softmax(dim=1)


def _spread_gate_cols(w, H, direction):
    """Spread a per-direction (in, 4H) weight (PyTorch gate order i,f,g,o) into
    the fused interleaved-gate column layout (in, 8H):
    [i_f, i_b, f_f, f_b, g_f, g_b, o_f, o_b]."""
    in_dim = w.shape[0]
    z = jnp.zeros((in_dim, H), jnp.float32)
    parts = []
    for k in range(4):
        blk = w[:, k * H:(k + 1) * H]
        parts += ([blk, z] if direction == 0 else [z, blk])
    return jnp.concatenate(parts, axis=1)


def _pack_lstm_weights(lstm_params, H, num_layers):
    """Pack all fused per-layer LSTM weights into one (rows, 8H) slab.

    Per layer (row offsets are 8-aligned):
      W_cat (2*in_dim, 8H): vstack of fwd/bwd input projections, so that
         [x(t) | x(T-1-t)] @ W_cat gives both directions' gate inputs at once,
      W_hh  (2H, 8H): block-diagonal fused recurrent weights,
      b     (8, 8H): interleaved fwd/bwd gate bias in row 0 (padded to 8 rows).
    """
    pieces, layer_offs, off = [], [], 0
    for layer in range(num_layers):
        w_ih_f, w_hh_f, b_f = lstm_params[2 * layer]
        w_ih_b, w_hh_b, b_b = lstm_params[2 * layer + 1]
        in_dim = w_ih_f.shape[0]
        w_cat = jnp.concatenate([_spread_gate_cols(w_ih_f, H, 0),
                                 _spread_gate_cols(w_ih_b, H, 1)], axis=0)
        w_hh = jnp.concatenate([_spread_gate_cols(w_hh_f, H, 0),
                                _spread_gate_cols(w_hh_b, H, 1)], axis=0)
        b_parts = []
        for k in range(4):
            sl = slice(k * H, (k + 1) * H)
            b_parts += [b_f[:, sl], b_b[:, sl]]
        b = jnp.concatenate(b_parts, axis=1)                     # (1, 8H)
        b = jnp.concatenate([b, jnp.zeros((7, 8 * H), jnp.float32)], axis=0)
        wc_off = off
        hh_off = wc_off + 2 * in_dim
        b_off = hh_off + 2 * H
        off = b_off + 8
        pieces += [w_cat, w_hh, b]
        layer_offs.append((2 * in_dim, wc_off, hh_off, b_off))
    return jnp.concatenate(pieces, axis=0), tuple(layer_offs)


def lstm_text_classifier(token_ids, emb_table, lstm_params, fc_w, fc_b):
    # Embedding lookup (data-dependent gather) stays in plain JAX glue.
    embed = jnp.take(emb_table, token_ids, axis=0)        # (B, T, E)
    B, T, E = embed.shape
    H = lstm_params[0][1].shape[0]
    num_layers = len(lstm_params) // 2
    C = fc_w.shape[1]

    # Time-major slab with the time-reversed copy alongside: row block t is
    # [embed(t) | embed(T-1-t)] -> enables one fused input-projection matmul.
    embed_tm = jnp.transpose(embed, (1, 0, 2))            # (T, B, E)
    x_cat0 = jnp.concatenate([embed_tm, embed_tm[::-1]],
                             axis=-1).reshape(T * B, 2 * E)

    w_slab, layer_offs = _pack_lstm_weights(lstm_params, H, num_layers)
    fc_slab = jnp.concatenate(
        [fc_w, jnp.concatenate([fc_b, jnp.zeros((7, C), jnp.float32)], axis=0)],
        axis=0)                                           # (E + 2H + 8, C)
    fc_offs = (0, E, E + 2 * H)

    kernel = functools.partial(
        _lstm_classifier_kernel, T=T, B=B, E=E, H=H, C=C,
        num_layers=num_layers, layer_offs=layer_offs, fc_offs=fc_offs)

    vmem = pl.BlockSpec(memory_space=pltpu.MemorySpace.VMEM)
    out = pl.pallas_call(
        kernel,
        out_shape=jax.ShapeDtypeStruct((B, C), jnp.float32),
        in_specs=[vmem, vmem, vmem],
        out_specs=vmem,
    )(x_cat0, w_slab, fc_slab)
    return out


def reference_forward(token_ids, emb_table, lstm_params, fc_w, fc_b):
    """Pure-JAX reference mirroring the PyTorch forward (eval mode)."""
    embed = jnp.take(emb_table, token_ids, axis=0)        # (B, T, E)
    B, T, _ = embed.shape
    H = lstm_params[0][1].shape[0]
    num_layers = len(lstm_params) // 2
    x = embed
    for layer in range(num_layers):
        outs = []
        for d in range(2):
            w_ih, w_hh, b = lstm_params[layer * 2 + d]
            h = jnp.zeros((B, H), jnp.float32)
            c = jnp.zeros((B, H), jnp.float32)
            hs = [None] * T
            time_order = range(T) if d == 0 else range(T - 1, -1, -1)
            for t in time_order:
                g = x[:, t, :] @ w_ih + h @ w_hh + b
                i_g = jax.nn.sigmoid(g[:, :H])
                f_g = jax.nn.sigmoid(g[:, H:2 * H])
                g_g = jnp.tanh(g[:, 2 * H:3 * H])
                o_g = jax.nn.sigmoid(g[:, 3 * H:])
                c = f_g * c + i_g * g_g
                h = o_g * jnp.tanh(c)
                hs[t] = h
            outs.append(jnp.stack(hs, axis=1))            # (B, T, H)
        x = jnp.concatenate(outs, axis=-1)                # (B, T, 2H)
    feat = jax.nn.relu(jnp.concatenate([embed, x], axis=-1))  # (B, T, E+2H)
    pooled = jnp.max(feat, axis=1)                        # (B, E+2H)
    logits = pooled @ fc_w + fc_b
    return jax.nn.softmax(logits, axis=1)


def init_params(key, n_vocab, E, H, num_layers, num_classes):
    keys = iter(jax.random.split(key, 64))
    emb = jax.random.normal(next(keys), (n_vocab, E), jnp.float32)
    emb = emb.at[n_vocab - 1].set(0.0)        # padding_idx = n_vocab - 1
    k = 1.0 / (H ** 0.5)
    lstm_params = []
    for layer in range(num_layers):
        in_dim = E if layer == 0 else 2 * H
        for _ in range(2):                    # forward, reverse
            w_ih = jax.random.uniform(next(keys), (4 * H, in_dim), jnp.float32, -k, k)
            w_hh = jax.random.uniform(next(keys), (4 * H, H), jnp.float32, -k, k)
            b_ih = jax.random.uniform(next(keys), (4 * H,), jnp.float32, -k, k)
            b_hh = jax.random.uniform(next(keys), (4 * H,), jnp.float32, -k, k)
            lstm_params.append((w_ih.T, w_hh.T, (b_ih + b_hh).reshape(1, 4 * H)))
    F = E + 2 * H
    kf = 1.0 / (F ** 0.5)
    fc_w = jax.random.uniform(next(keys), (num_classes, F), jnp.float32, -kf, kf).T
    fc_b = jax.random.uniform(next(keys), (1, num_classes), jnp.float32, -kf, kf)
    return emb, lstm_params, fc_w, fc_b


if __name__ == "__main__":
    # config: n_vocab=32, embed_size=32, hidden_size=32, num_layers=2,
    #         pad_size (seq len)=8, num_classes=4, batch=2
    n_vocab, E, H, num_layers, T, C, B = 32, 32, 32, 2, 8, 4, 2

    key = jax.random.PRNGKey(0)
    k_tok, k_param = jax.random.split(key)
    token_ids = jax.random.randint(k_tok, (B, T), 0, n_vocab, dtype=jnp.int32)
    emb_table, lstm_params, fc_w, fc_b = init_params(
        k_param, n_vocab, E, H, num_layers, C)

    out = lstm_text_classifier(token_ids, emb_table, lstm_params, fc_w, fc_b)
    out = jax.block_until_ready(out)

    ref = reference_forward(token_ids, emb_table, lstm_params, fc_w, fc_b)
    assert out.shape == (B, C)
    assert bool(jnp.all(jnp.isfinite(out)))
    assert bool(jnp.allclose(jnp.sum(out, axis=1), 1.0, atol=1e-4))
    assert bool(jnp.allclose(out, ref, atol=1e-3, rtol=1e-3))
    print("KERNEL_OK")
</pallas_src>

<mosaic_0001>
module attributes {stable_mosaic.version = 11 : i64} {
  func.func @_lstm_classifier_kernel(%arg0: memref<16x64xf32, #tpu.memory_space<vmem>>, %arg1: memref<336x256xf32, #tpu.memory_space<vmem>>, %arg2: memref<104x4xf32, #tpu.memory_space<vmem>>, %arg3: memref<2x4xf32, #tpu.memory_space<vmem>>) attributes {dimension_semantics = [], scalar_prefetch = 0 : i64, scratch_operands = 0 : i64, tpu.core_type = #tpu.core_type<tc>} {
    %0 = tpu.iota {dimensions = array<i32: 1>} : vector<2x256xi32>
    %c128_i32 = arith.constant 128 : i32
    %1 = vector.broadcast %c128_i32 : i32 to vector<2x256xi32>
    %2 = arith.cmpi sge, %0, %1 : vector<2x256xi32>
    %c192_i32 = arith.constant 192 : i32
    %3 = vector.broadcast %c192_i32 : i32 to vector<2x256xi32>
    %4 = arith.cmpi slt, %0, %3 : vector<2x256xi32>
    %5 = arith.andi %2, %4 : vector<2x256xi1>
    %c0 = arith.constant 0 : index
    %c0_0 = arith.constant 0 : index
    %6 = vector.load %arg0[%c0, %c0_0] : memref<16x64xf32, #tpu.memory_space<vmem>>, vector<16x64xf32>
    %c0_1 = arith.constant 0 : index
    %c0_2 = arith.constant 0 : index
    %7 = vector.load %arg1[%c0_1, %c0_2] : memref<336x256xf32, #tpu.memory_space<vmem>>, vector<64x256xf32>
    %c64 = arith.constant 64 : index
    %c0_3 = arith.constant 0 : index
    %8 = vector.load %arg1[%c64, %c0_3] : memref<336x256xf32, #tpu.memory_space<vmem>>, vector<64x256xf32>
    %c128 = arith.constant 128 : index
    %c0_4 = arith.constant 0 : index
    %9 = vector.load %arg1[%c128, %c0_4] : memref<336x256xf32, #tpu.memory_space<vmem>>, vector<1x256xf32>
    %cst = arith.constant dense<0.000000e+00> : vector<16x256xf32>
    %10 = tpu.matmul %6, %7, %cst {dimension_numbers = #tpu.dot_dimension_numbers<[1], [0], [0], [1], [0, 0, 1, 1], [], []>} : vector<16x64xf32>, vector<64x256xf32>, vector<16x256xf32> -> vector<16x256xf32>
    %11 = vector.broadcast %9 : vector<1x256xf32> to vector<16x256xf32>
    %12 = arith.addf %10, %11 : vector<16x256xf32>
    %cst_5 = arith.constant 0.000000e+00 : f32
    %13 = vector.broadcast %cst_5 : f32 to vector<2x64xf32>
    %cst_6 = arith.constant 0.000000e+00 : f32
    %14 = vector.broadcast %cst_6 : f32 to vector<2x64xf32>
    %15 = vector.extract_strided_slice %12 {offsets = [0, 0], sizes = [2, 256], strides = [1, 1]} : vector<16x256xf32> to vector<2x256xf32>
    %cst_7 = arith.constant dense<0.000000e+00> : vector<2x256xf32>
    %16 = tpu.matmul %13, %8, %cst_7 {dimension_numbers = #tpu.dot_dimension_numbers<[1], [0], [0], [1], [0, 0, 1, 1], [], []>} : vector<2x64xf32>, vector<64x256xf32>, vector<2x256xf32> -> vector<2x256xf32>
    %17 = arith.addf %15, %16 : vector<2x256xf32>
    %cst_8 = arith.constant 5.000000e-01 : f32
    %18 = vector.broadcast %cst_8 : f32 to vector<2x256xf32>
    %19 = arith.mulf %18, %17 : vector<2x256xf32>
    %20 = arith.select %5, %17, %19 : vector<2x256xi1>, vector<2x256xf32>
    %21 = math.tanh %20 : vector<2x256xf32>
    %cst_9 = arith.constant 5.000000e-01 : f32
    %22 = vector.broadcast %cst_9 : f32 to vector<2x256xf32>
    %23 = arith.mulf %22, %21 : vector<2x256xf32>
    %cst_10 = arith.constant 5.000000e-01 : f32
    %24 = vector.broadcast %cst_10 : f32 to vector<2x256xf32>
    %25 = arith.addf %23, %24 : vector<2x256xf32>
    %26 = arith.select %5, %21, %25 : vector<2x256xi1>, vector<2x256xf32>
    %27 = vector.extract_strided_slice %26 {offsets = [0, 0], sizes = [2, 64], strides = [1, 1]} : vector<2x256xf32> to vector<2x64xf32>
    %28 = vector.extract_strided_slice %26 {offsets = [0, 64], sizes = [2, 64], strides = [1, 1]} : vector<2x256xf32> to vector<2x64xf32>
    %29 = vector.extract_strided_slice %26 {offsets = [0, 128], sizes = [2, 64], strides = [1, 1]} : vector<2x256xf32> to vector<2x64xf32>
    %30 = vector.extract_strided_slice %26 {offsets = [0, 192], sizes = [2, 64], strides = [1, 1]} : vector<2x256xf32> to vector<2x64xf32>
    %31 = arith.mulf %28, %14 : vector<2x64xf32>
    %32 = arith.mulf %27, %29 : vector<2x64xf32>
    %33 = arith.addf %31, %32 : vector<2x64xf32>
    %34 = math.tanh %33 : vector<2x64xf32>
    %35 = arith.mulf %30, %34 : vector<2x64xf32>
    %36 = vector.extract_strided_slice %35 {offsets = [0, 0], sizes = [2, 32], strides = [1, 1]} : vector<2x64xf32> to vector<2x32xf32>
    %37 = vector.extract_strided_slice %35 {offsets = [0, 32], sizes = [2, 32], strides = [1, 1]} : vector<2x64xf32> to vector<2x32xf32>
    %38 = vector.extract_strided_slice %12 {offsets = [2, 0], sizes = [2, 256], strides = [1, 1]} : vector<16x256xf32> to vector<2x256xf32>
    %cst_11 = arith.constant dense<0.000000e+00> : vector<2x256xf32>
    %39 = tpu.matmul %35, %8, %cst_11 {dimension_numbers = #tpu.dot_dimension_numbers<[1], [0], [0], [1], [0, 0, 1, 1], [], []>} : vector<2x64xf32>, vector<64x256xf32>, vector<2x256xf32> -> vector<2x256xf32>
    %40 = arith.addf %38, %39 : vector<2x256xf32>
    %cst_12 = arith.constant 5.000000e-01 : f32
    %41 = vector.broadcast %cst_12 : f32 to vector<2x256xf32>
    %42 = arith.mulf %41, %40 : vector<2x256xf32>
    %43 = arith.select %5, %40, %42 : vector<2x256xi1>, vector<2x256xf32>
    %44 = math.tanh %43 : vector<2x256xf32>
    %cst_13 = arith.constant 5.000000e-01 : f32
    %45 = vector.broadcast %cst_13 : f32 to vector<2x256xf32>
    %46 = arith.mulf %45, %44 : vector<2x256xf32>
    %cst_14 = arith.constant 5.000000e-01 : f32
    %47 = vector.broadcast %cst_14 : f32 to vector<2x256xf32>
    %48 = arith.addf %46, %47 : vector<2x256xf32>
    %49 = arith.select %5, %44, %48 : vector<2x256xi1>, vector<2x256xf32>
    %50 = vector.extract_strided_slice %49 {offsets = [0, 0], sizes = [2, 64], strides = [1, 1]} : vector<2x256xf32> to vector<2x64xf32>
    %51 = vector.extract_strided_slice %49 {offsets = [0, 64], sizes = [2, 64], strides = [1, 1]} : vector<2x256xf32> to vector<2x64xf32>
    %52 = vector.extract_strided_slice %49 {offsets = [0, 128], sizes = [2, 64], strides = [1, 1]} : vector<2x256xf32> to vector<2x64xf32>
    %53 = vector.extract_strided_slice %49 {offsets = [0, 192], sizes = [2, 64], strides = [1, 1]} : vector<2x256xf32> to vector<2x64xf32>
    %54 = arith.mulf %51, %33 : vector<2x64xf32>
    %55 = arith.mulf %50, %52 : vector<2x64xf32>
    %56 = arith.addf %54, %55 : vector<2x64xf32>
    %57 = math.tanh %56 : vector<2x64xf32>
    %58 = arith.mulf %53, %57 : vector<2x64xf32>
    %59 = vector.extract_strided_slice %58 {offsets = [0, 0], sizes = [2, 32], strides = [1, 1]} : vector<2x64xf32> to vector<2x32xf32>
    %60 = vector.extract_strided_slice %58 {offsets = [0, 32], sizes = [2, 32], strides = [1, 1]} : vector<2x64xf32> to vector<2x32xf32>
    %61 = vector.extract_strided_slice %12 {offsets = [4, 0], sizes = [2, 256], strides = [1, 1]} : vector<16x256xf32> to vector<2x256xf32>
    %cst_15 = arith.constant dense<0.000000e+00> : vector<2x256xf32>
    %62 = tpu.matmul %58, %8, %cst_15 {dimension_numbers = #tpu.dot_dimension_numbers<[1], [0], [0], [1], [0, 0, 1, 1], [], []>} : vector<2x64xf32>, vector<64x256xf32>, vector<2x256xf32> -> vector<2x256xf32>
    %63 = arith.addf %61, %62 : vector<2x256xf32>
    %cst_16 = arith.constant 5.000000e-01 : f32
    %64 = vector.broadcast %cst_16 : f32 to vector<2x256xf32>
    %65 = arith.mulf %64, %63 : vector<2x256xf32>
    %66 = arith.select %5, %63, %65 : vector<2x256xi1>, vector<2x256xf32>
    %67 = math.tanh %66 : vector<2x256xf32>
    %cst_17 = arith.constant 5.000000e-01 : f32
    %68 = vector.broadcast %cst_17 : f32 to vector<2x256xf32>
    %69 = arith.mulf %68, %67 : vector<2x256xf32>
    %cst_18 = arith.constant 5.000000e-01 : f32
    %70 = vector.broadcast %cst_18 : f32 to vector<2x256xf32>
    %71 = arith.addf %69, %70 : vector<2x256xf32>
    %72 = arith.select %5, %67, %71 : vector<2x256xi1>, vector<2x256xf32>
    %73 = vector.extract_strided_slice %72 {offsets = [0, 0], sizes = [2, 64], strides = [1, 1]} : vector<2x256xf32> to vector<2x64xf32>
    %74 = vector.extract_strided_slice %72 {offsets = [0, 64], sizes = [2, 64], strides = [1, 1]} : vector<2x256xf32> to vector<2x64xf32>
    %75 = vector.extract_strided_slice %72 {offsets = [0, 128], sizes = [2, 64], strides = [1, 1]} : vector<2x256xf32> to vector<2x64xf32>
    %76 = vector.extract_strided_slice %72 {offsets = [0, 192], sizes = [2, 64], strides = [1, 1]} : vector<2x256xf32> to vector<2x64xf32>
    %77 = arith.mulf %74, %56 : vector<2x64xf32>
    %78 = arith.mulf %73, %75 : vector<2x64xf32>
    %79 = arith.addf %77, %78 : vector<2x64xf32>
    %80 = math.tanh %79 : vector<2x64xf32>
    %81 = arith.mulf %76, %80 : vector<2x64xf32>
    %82 = vector.extract_strided_slice %81 {offsets = [0, 0], sizes = [2, 32], strides = [1, 1]} : vector<2x64xf32> to vector<2x32xf32>
    %83 = vector.extract_strided_slice %81 {offsets = [0, 32], sizes = [2, 32], strides = [1, 1]} : vector<2x64xf32> to vector<2x32xf32>
    %84 = vector.extract_strided_slice %12 {offsets = [6, 0], sizes = [2, 256], strides = [1, 1]} : vector<16x256xf32> to vector<2x256xf32>
    %cst_19 = arith.constant dense<0.000000e+00> : vector<2x256xf32>
    %85 = tpu.matmul %81, %8, %cst_19 {dimension_numbers = #tpu.dot_dimension_numbers<[1], [0], [0], [1], [0, 0, 1, 1], [], []>} : vector<2x64xf32>, vector<64x256xf32>, vector<2x256xf32> -> vector<2x256xf32>
    %86 = arith.addf %84, %85 : vector<2x256xf32>
    %cst_20 = arith.constant 5.000000e-01 : f32
    %87 = vector.broadcast %cst_20 : f32 to vector<2x256xf32>
    %88 = arith.mulf %87, %86 : vector<2x256xf32>
    %89 = arith.select %5, %86, %88 : vector<2x256xi1>, vector<2x256xf32>
    %90 = math.tanh %89 : vector<2x256xf32>
    %cst_21 = arith.constant 5.000000e-01 : f32
    %91 = vector.broadcast %cst_21 : f32 to vector<2x256xf32>
    %92 = arith.mulf %91, %90 : vector<2x256xf32>
    %cst_22 = arith.constant 5.000000e-01 : f32
    %93 = vector.broadcast %cst_22 : f32 to vector<2x256xf32>
    %94 = arith.addf %92, %93 : vector<2x256xf32>
    %95 = arith.select %5, %90, %94 : vector<2x256xi1>, vector<2x256xf32>
    %96 = vector.extract_strided_slice %95 {offsets = [0, 0], sizes = [2, 64], strides = [1, 1]} : vector<2x256xf32> to vector<2x64xf32>
    %97 = vector.extract_strided_slice %95 {offsets = [0, 64], sizes = [2, 64], strides = [1, 1]} : vector<2x256xf32> to vector<2x64xf32>
    %98 = vector.extract_strided_slice %95 {offsets = [0, 128], sizes = [2, 64], strides = [1, 1]} : vector<2x256xf32> to vector<2x64xf32>
    %99 = vector.extract_strided_slice %95 {offsets = [0, 192], sizes = [2, 64], strides = [1, 1]} : vector<2x256xf32> to vector<2x64xf32>
    %100 = arith.mulf %97, %79 : vector<2x64xf32>
    %101 = arith.mulf %96, %98 : vector<2x64xf32>
    %102 = arith.addf %100, %101 : vector<2x64xf32>
    %103 = math.tanh %102 : vector<2x64xf32>
    %104 = arith.mulf %99, %103 : vector<2x64xf32>
    %105 = vector.extract_strided_slice %104 {offsets = [0, 0], sizes = [2, 32], strides = [1, 1]} : vector<2x64xf32> to vector<2x32xf32>
    %106 = vector.extract_strided_slice %104 {offsets = [0, 32], sizes = [2, 32], strides = [1, 1]} : vector<2x64xf32> to vector<2x32xf32>
    %107 = vector.extract_strided_slice %12 {offsets = [8, 0], sizes = [2, 256], strides = [1, 1]} : vector<16x256xf32> to vector<2x256xf32>
    %cst_23 = arith.constant dense<0.000000e+00> : vector<2x256xf32>
    %108 = tpu.matmul %104, %8, %cst_23 {dimension_numbers = #tpu.dot_dimension_numbers<[1], [0], [0], [1], [0, 0, 1, 1], [], []>} : vector<2x64xf32>, vector<64x256xf32>, vector<2x256xf32> -> vector<2x256xf32>
    %109 = arith.addf %107, %108 : vector<2x256xf32>
    %cst_24 = arith.constant 5.000000e-01 : f32
    %110 = vector.broadcast %cst_24 : f32 to vector<2x256xf32>
    %111 = arith.mulf %110, %109 : vector<2x256xf32>
    %112 = arith.select %5, %109, %111 : vector<2x256xi1>, vector<2x256xf32>
    %113 = math.tanh %112 : vector<2x256xf32>
    %cst_25 = arith.constant 5.000000e-01 : f32
    %114 = vector.broadcast %cst_25 : f32 to vector<2x256xf32>
    %115 = arith.mulf %114, %113 : vector<2x256xf32>
    %cst_26 = arith.constant 5.000000e-01 : f32
    %116 = vector.broadcast %cst_26 : f32 to vector<2x256xf32>
    %117 = arith.addf %115, %116 : vector<2x256xf32>
    %118 = arith.select %5, %113, %117 : vector<2x256xi1>, vector<2x256xf32>
    %119 = vector.extract_strided_slice %118 {offsets = [0, 0], sizes = [2, 64], strides = [1, 1]} : vector<2x256xf32> to vector<2x64xf32>
    %120 = vector.extract_strided_slice %118 {offsets = [0, 64], sizes = [2, 64], strides = [1, 1]} : vector<2x256xf32> to vector<2x64xf32>
    %121 = vector.extract_strided_slice %118 {offsets = [0, 128], sizes = [2, 64], strides = [1, 1]} : vector<2x256xf32> to vector<2x64xf32>
    %122 = vector.extract_strided_slice %118 {offsets = [0, 192], sizes = [2, 64], strides = [1, 1]} : vector<2x256xf32> to vector<2x64xf32>
    %123 = arith.mulf %120, %102 : vector<2x64xf32>
    %124 = arith.mulf %119, %121 : vector<2x64xf32>
    %125 = arith.addf %123, %124 : vector<2x64xf32>
    %126 = math.tanh %125 : vector<2x64xf32>
    %127 = arith.mulf %122, %126 : vector<2x64xf32>
    %128 = vector.extract_strided_slice %127 {offsets = [0, 0], sizes = [2, 32], strides = [1, 1]} : vector<2x64xf32> to vector<2x32xf32>
    %129 = vector.extract_strided_slice %127 {offsets = [0, 32], sizes = [2, 32], strides = [1, 1]} : vector<2x64xf32> to vector<2x32xf32>
    %130 = vector.extract_strided_slice %12 {offsets = [10, 0], sizes = [2, 256], strides = [1, 1]} : vector<16x256xf32> to vector<2x256xf32>
    %cst_27 = arith.constant dense<0.000000e+00> : vector<2x256xf32>
    %131 = tpu.matmul %127, %8, %cst_27 {dimension_numbers = #tpu.dot_dimension_numbers<[1], [0], [0], [1], [0, 0, 1, 1], [], []>} : vector<2x64xf32>, vector<64x256xf32>, vector<2x256xf32> -> vector<2x256xf32>
    %132 = arith.addf %130, %131 : vector<2x256xf32>
    %cst_28 = arith.constant 5.000000e-01 : f32
    %133 = vector.broadcast %cst_28 : f32 to vector<2x256xf32>
    %134 = arith.mulf %133, %132 : vector<2x256xf32>
    %135 = arith.select %5, %132, %134 : vector<2x256xi1>, vector<2x256xf32>
    %136 = math.tanh %135 : vector<2x256xf32>
    %cst_29 = arith.constant 5.000000e-01 : f32
    %137 = vector.broadcast %cst_29 : f32 to vector<2x256xf32>
    %138 = arith.mulf %137, %136 : vector<2x256xf32>
    %cst_30 = arith.constant 5.000000e-01 : f32
    %139 = vector.broadcast %cst_30 : f32 to vector<2x256xf32>
    %140 = arith.addf %138, %139 : vector<2x256xf32>
    %141 = arith.select %5, %136, %140 : vector<2x256xi1>, vector<2x256xf32>
    %142 = vector.extract_strided_slice %141 {offsets = [0, 0], sizes = [2, 64], strides = [1, 1]} : vector<2x256xf32> to vector<2x64xf32>
    %143 = vector.extract_strided_slice %141 {offsets = [0, 64], sizes = [2, 64], strides = [1, 1]} : vector<2x256xf32> to vector<2x64xf32>
    %144 = vector.extract_strided_slice %141 {offsets = [0, 128], sizes = [2, 64], strides = [1, 1]} : vector<2x256xf32> to vector<2x64xf32>
    %145 = vector.extract_strided_slice %141 {offsets = [0, 192], sizes = [2, 64], strides = [1, 1]} : vector<2x256xf32> to vector<2x64xf32>
    %146 = arith.mulf %143, %125 : vector<2x64xf32>
    %147 = arith.mulf %142, %144 : vector<2x64xf32>
    %148 = arith.addf %146, %147 : vector<2x64xf32>
    %149 = math.tanh %148 : vector<2x64xf32>
    %150 = arith.mulf %145, %149 : vector<2x64xf32>
    %151 = vector.extract_strided_slice %150 {offsets = [0, 0], sizes = [2, 32], strides = [1, 1]} : vector<2x64xf32> to vector<2x32xf32>
    %152 = vector.extract_strided_slice %150 {offsets = [0, 32], sizes = [2, 32], strides = [1, 1]} : vector<2x64xf32> to vector<2x32xf32>
    %153 = vector.extract_strided_slice %12 {offsets = [12, 0], sizes = [2, 256], strides = [1, 1]} : vector<16x256xf32> to vector<2x256xf32>
    %cst_31 = arith.constant dense<0.000000e+00> : vector<2x256xf32>
    %154 = tpu.matmul %150, %8, %cst_31 {dimension_numbers = #tpu.dot_dimension_numbers<[1], [0], [0], [1], [0, 0, 1, 1], [], []>} : vector<2x64xf32>, vector<64x256xf32>, vector<2x256xf32> -> vector<2x256xf32>
    %155 = arith.addf %153, %154 : vector<2x256xf32>
    %cst_32 = arith.constant 5.000000e-01 : f32
    %156 = vector.broadcast %cst_32 : f32 to vector<2x256xf32>
    %157 = arith.mulf %156, %155 : vector<2x256xf32>
    %158 = arith.select %5, %155, %157 : vector<2x256xi1>, vector<2x256xf32>
    %159 = math.tanh %158 : vector<2x256xf32>
    %cst_33 = arith.constant 5.000000e-01 : f32
    %160 = vector.broadcast %cst_33 : f32 to vector<2x256xf32>
    %161 = arith.mulf %160, %159 : vector<2x256xf32>
    %cst_34 = arith.constant 5.000000e-01 : f32
    %162 = vector.broadcast %cst_34 : f32 to vector<2x256xf32>
    %163 = arith.addf %161, %162 : vector<2x256xf32>
    %164 = arith.select %5, %159, %163 : vector<2x256xi1>, vector<2x256xf32>
    %165 = vector.extract_strided_slice %164 {offsets = [0, 0], sizes = [2, 64], strides = [1, 1]} : vector<2x256xf32> to vector<2x64xf32>
    %166 = vector.extract_strided_slice %164 {offsets = [0, 64], sizes = [2, 64], strides = [1, 1]} : vector<2x256xf32> to vector<2x64xf32>
    %167 = vector.extract_strided_slice %164 {offsets = [0, 128], sizes = [2, 64], strides = [1, 1]} : vector<2x256xf32> to vector<2x64xf32>
    %168 = vector.extract_strided_slice %164 {offsets = [0, 192], sizes = [2, 64], strides = [1, 1]} : vector<2x256xf32> to vector<2x64xf32>
    %169 = arith.mulf %166, %148 : vector<2x64xf32>
    %170 = arith.mulf %165, %167 : vector<2x64xf32>
    %171 = arith.addf %169, %170 : vector<2x64xf32>
    %172 = math.tanh %171 : vector<2x64xf32>
    %173 = arith.mulf %168, %172 : vector<2x64xf32>
    %174 = vector.extract_strided_slice %173 {offsets = [0, 0], sizes = [2, 32], strides = [1, 1]} : vector<2x64xf32> to vector<2x32xf32>
    %175 = vector.extract_strided_slice %173 {offsets = [0, 32], sizes = [2, 32], strides = [1, 1]} : vector<2x64xf32> to vector<2x32xf32>
    %176 = vector.extract_strided_slice %12 {offsets = [14, 0], sizes = [2, 256], strides = [1, 1]} : vector<16x256xf32> to vector<2x256xf32>
    %cst_35 = arith.constant dense<0.000000e+00> : vector<2x256xf32>
    %177 = tpu.matmul %173, %8, %cst_35 {dimension_numbers = #tpu.dot_dimension_numbers<[1], [0], [0], [1], [0, 0, 1, 1], [], []>} : vector<2x64xf32>, vector<64x256xf32>, vector<2x256xf32> -> vector<2x256xf32>
    %178 = arith.addf %176, %177 : vector<2x256xf32>
    %cst_36 = arith.constant 5.000000e-01 : f32
    %179 = vector.broadcast %cst_36 : f32 to vector<2x256xf32>
    %180 = arith.mulf %179, %178 : vector<2x256xf32>
    %181 = arith.select %5, %178, %180 : vector<2x256xi1>, vector<2x256xf32>
    %182 = math.tanh %181 : vector<2x256xf32>
    %cst_37 = arith.constant 5.000000e-01 : f32
    %183 = vector.broadcast %cst_37 : f32 to vector<2x256xf32>
    %184 = arith.mulf %183, %182 : vector<2x256xf32>
    %cst_38 = arith.constant 5.000000e-01 : f32
    %185 = vector.broadcast %cst_38 : f32 to vector<2x256xf32>
    %186 = arith.addf %184, %185 : vector<2x256xf32>
    %187 = arith.select %5, %182, %186 : vector<2x256xi1>, vector<2x256xf32>
    %188 = vector.extract_strided_slice %187 {offsets = [0, 0], sizes = [2, 64], strides = [1, 1]} : vector<2x256xf32> to vector<2x64xf32>
    %189 = vector.extract_strided_slice %187 {offsets = [0, 64], sizes = [2, 64], strides = [1, 1]} : vector<2x256xf32> to vector<2x64xf32>
    %190 = vector.extract_strided_slice %187 {offsets = [0, 128], sizes = [2, 64], strides = [1, 1]} : vector<2x256xf32> to vector<2x64xf32>
    %191 = vector.extract_strided_slice %187 {offsets = [0, 192], sizes = [2, 64], strides = [1, 1]} : vector<2x256xf32> to vector<2x64xf32>
    %192 = arith.mulf %189, %171 : vector<2x64xf32>
    %193 = arith.mulf %188, %190 : vector<2x64xf32>
    %194 = arith.addf %192, %193 : vector<2x64xf32>
    %195 = math.tanh %194 : vector<2x64xf32>
    %196 = arith.mulf %191, %195 : vector<2x64xf32>
    %197 = vector.extract_strided_slice %196 {offsets = [0, 0], sizes = [2, 32], strides = [1, 1]} : vector<2x64xf32> to vector<2x32xf32>
    %198 = vector.extract_strided_slice %196 {offsets = [0, 32], sizes = [2, 32], strides = [1, 1]} : vector<2x64xf32> to vector<2x32xf32>
    %199 = tpu.concatenate %36, %198, %197, %37 in 1 : vector<2x32xf32>, vector<2x32xf32>, vector<2x32xf32>, vector<2x32xf32> -> vector<2x128xf32>
    %200 = tpu.concatenate %59, %175, %174, %60 in 1 : vector<2x32xf32>, vector<2x32xf32>, vector<2x32xf32>, vector<2x32xf32> -> vector<2x128xf32>
    %201 = tpu.concatenate %82, %152, %151, %83 in 1 : vector<2x32xf32>, vector<2x32xf32>, vector<2x32xf32>, vector<2x32xf32> -> vector<2x128xf32>
    %202 = tpu.concatenate %105, %129, %128, %106 in 1 : vector<2x32xf32>, vector<2x32xf32>, vector<2x32xf32>, vector<2x32xf32> -> vector<2x128xf32>
    %203 = tpu.concatenate %128, %106, %105, %129 in 1 : vector<2x32xf32>, vector<2x32xf32>, vector<2x32xf32>, vector<2x32xf32> -> vector<2x128xf32>
    %204 = tpu.concatenate %151, %83, %82, %152 in 1 : vector<2x32xf32>, vector<2x32xf32>, vector<2x32xf32>, vector<2x32xf32> -> vector<2x128xf32>
    %205 = tpu.concatenate %174, %60, %59, %175 in 1 : vector<2x32xf32>, vector<2x32xf32>, vector<2x32xf32>, vector<2x32xf32> -> vector<2x128xf32>
    %206 = tpu.concatenate %197, %37, %36, %198 in 1 : vector<2x32xf32>, vector<2x32xf32>, vector<2x32xf32>, vector<2x32xf32> -> vector<2x128xf32>
    %207 = tpu.concatenate %199, %200, %201, %202, %203, %204, %205, %206 in 0 : vector<2x128xf32>, vector<2x128xf32>, vector<2x128xf32>, vector<2x128xf32>, vector<2x128xf32>, vector<2x128xf32>, vector<2x128xf32>, vector<2x128xf32> -> vector<16x128xf32>
    %c136 = arith.constant 136 : index
    %c0_39 = arith.constant 0 : index
    %208 = vector.load %arg1[%c136, %c0_39] : memref<336x256xf32, #tpu.memory_space<vmem>>, vector<128x256xf32>
    %c264 = arith.constant 264 : index
    %c0_40 = arith.constant 0 : index
    %209 = vector.load %arg1[%c264, %c0_40] : memref<336x256xf32, #tpu.memory_space<vmem>>, vector<64x256xf32>
    %c328 = arith.constant 328 : index
    %c0_41 = arith.constant 0 : index
    %210 = vector.load %arg1[%c328, %c0_41] : memref<336x256xf32, #tpu.memory_space<vmem>>, vector<1x256xf32>
    %cst_42 = arith.constant dense<0.000000e+00> : vector<16x256xf32>
    %211 = tpu.matmul %207, %208, %cst_42 {dimension_numbers = #tpu.dot_dimension_numbers<[1], [0], [0], [1], [0, 0, 1, 1], [], []>} : vector<16x128xf32>, vector<128x256xf32>, vector<16x256xf32> -> vector<16x256xf32>
    %212 = vector.broadcast %210 : vector<1x256xf32> to vector<16x256xf32>
    %213 = arith.addf %211, %212 : vector<16x256xf32>
    %cst_43 = arith.constant 0.000000e+00 : f32
    %214 = vector.broadcast %cst_43 : f32 to vector<2x64xf32>
    %cst_44 = arith.constant 0.000000e+00 : f32
    %215 = vector.broadcast %cst_44 : f32 to vector<2x64xf32>
    %cst_45 = arith.constant 0.000000e+00 : f32
    %216 = vector.broadcast %cst_45 : f32 to vector<2x64xf32>
    %217 = vector.extract_strided_slice %213 {offsets = [0, 0], sizes = [2, 256], strides = [1, 1]} : vector<16x256xf32> to vector<2x256xf32>
    %cst_46 = arith.constant dense<0.000000e+00> : vector<2x256xf32>
    %218 = tpu.matmul %214, %209, %cst_46 {dimension_numbers = #tpu.dot_dimension_numbers<[1], [0], [0], [1], [0, 0, 1, 1], [], []>} : vector<2x64xf32>, vector<64x256xf32>, vector<2x256xf32> -> vector<2x256xf32>
    %219 = arith.addf %217, %218 : vector<2x256xf32>
    %cst_47 = arith.constant 5.000000e-01 : f32
    %220 = vector.broadcast %cst_47 : f32 to vector<2x256xf32>
    %221 = arith.mulf %220, %219 : vector<2x256xf32>
    %222 = arith.select %5, %219, %221 : vector<2x256xi1>, vector<2x256xf32>
    %223 = math.tanh %222 : vector<2x256xf32>
    %cst_48 = arith.constant 5.000000e-01 : f32
    %224 = vector.broadcast %cst_48 : f32 to vector<2x256xf32>
    %225 = arith.mulf %224, %223 : vector<2x256xf32>
    %cst_49 = arith.constant 5.000000e-01 : f32
    %226 = vector.broadcast %cst_49 : f32 to vector<2x256xf32>
    %227 = arith.addf %225, %226 : vector<2x256xf32>
    %228 = arith.select %5, %223, %227 : vector<2x256xi1>, vector<2x256xf32>
    %229 = vector.extract_strided_slice %228 {offsets = [0, 0], sizes = [2, 64], strides = [1, 1]} : vector<2x256xf32> to vector<2x64xf32>
    %230 = vector.extract_strided_slice %228 {offsets = [0, 64], sizes = [2, 64], strides = [1, 1]} : vector<2x256xf32> to vector<2x64xf32>
    %231 = vector.extract_strided_slice %228 {offsets = [0, 128], sizes = [2, 64], strides = [1, 1]} : vector<2x256xf32> to vector<2x64xf32>
    %232 = vector.extract_strided_slice %228 {offsets = [0, 192], sizes = [2, 64], strides = [1, 1]} : vector<2x256xf32> to vector<2x64xf32>
    %233 = arith.mulf %230, %215 : vector<2x64xf32>
    %234 = arith.mulf %229, %231 : vector<2x64xf32>
    %235 = arith.addf %233, %234 : vector<2x64xf32>
    %236 = math.tanh %235 : vector<2x64xf32>
    %237 = arith.mulf %232, %236 : vector<2x64xf32>
    %238 = arith.maximumf %216, %237 : vector<2x64xf32>
    %239 = vector.extract_strided_slice %213 {offsets = [2, 0], sizes = [2, 256], strides = [1, 1]} : vector<16x256xf32> to vector<2x256xf32>
    %cst_50 = arith.constant dense<0.000000e+00> : vector<2x256xf32>
    %240 = tpu.matmul %237, %209, %cst_50 {dimension_numbers = #tpu.dot_dimension_numbers<[1], [0], [0], [1], [0, 0, 1, 1], [], []>} : vector<2x64xf32>, vector<64x256xf32>, vector<2x256xf32> -> vector<2x256xf32>
    %241 = arith.addf %239, %240 : vector<2x256xf32>
    %cst_51 = arith.constant 5.000000e-01 : f32
    %242 = vector.broadcast %cst_51 : f32 to vector<2x256xf32>
    %243 = arith.mulf %242, %241 : vector<2x256xf32>
    %244 = arith.select %5, %241, %243 : vector<2x256xi1>, vector<2x256xf32>
    %245 = math.tanh %244 : vector<2x256xf32>
    %cst_52 = arith.constant 5.000000e-01 : f32
    %246 = vector.broadcast %cst_52 : f32 to vector<2x256xf32>
    %247 = arith.mulf %246, %245 : vector<2x256xf32>
    %cst_53 = arith.constant 5.000000e-01 : f32
    %248 = vector.broadcast %cst_53 : f32 to vector<2x256xf32>
    %249 = arith.addf %247, %248 : vector<2x256xf32>
    %250 = arith.select %5, %245, %249 : vector<2x256xi1>, vector<2x256xf32>
    %251 = vector.extract_strided_slice %250 {offsets = [0, 0], sizes = [2, 64], strides = [1, 1]} : vector<2x256xf32> to vector<2x64xf32>
    %252 = vector.extract_strided_slice %250 {offsets = [0, 64], sizes = [2, 64], strides = [1, 1]} : vector<2x256xf32> to vector<2x64xf32>
    %253 = vector.extract_strided_slice %250 {offsets = [0, 128], sizes = [2, 64], strides = [1, 1]} : vector<2x256xf32> to vector<2x64xf32>
    %254 = vector.extract_strided_slice %250 {offsets = [0, 192], sizes = [2, 64], strides = [1, 1]} : vector<2x256xf32> to vector<2x64xf32>
    %255 = arith.mulf %252, %235 : vector<2x64xf32>
    %256 = arith.mulf %251, %253 : vector<2x64xf32>
    %257 = arith.addf %255, %256 : vector<2x64xf32>
    %258 = math.tanh %257 : vector<2x64xf32>
    %259 = arith.mulf %254, %258 : vector<2x64xf32>
    %260 = arith.maximumf %238, %259 : vector<2x64xf32>
    %261 = vector.extract_strided_slice %213 {offsets = [4, 0], sizes = [2, 256], strides = [1, 1]} : vector<16x256xf32> to vector<2x256xf32>
    %cst_54 = arith.constant dense<0.000000e+00> : vector<2x256xf32>
    %262 = tpu.matmul %259, %209, %cst_54 {dimension_numbers = #tpu.dot_dimension_numbers<[1], [0], [0], [1], [0, 0, 1, 1], [], []>} : vector<2x64xf32>, vector<64x256xf32>, vector<2x256xf32> -> vector<2x256xf32>
    %263 = arith.addf %261, %262 : vector<2x256xf32>
    %cst_55 = arith.constant 5.000000e-01 : f32
    %264 = vector.broadcast %cst_55 : f32 to vector<2x256xf32>
    %265 = arith.mulf %264, %263 : vector<2x256xf32>
    %266 = arith.select %5, %263, %265 : vector<2x256xi1>, vector<2x256xf32>
    %267 = math.tanh %266 : vector<2x256xf32>
    %cst_56 = arith.constant 5.000000e-01 : f32
    %268 = vector.broadcast %cst_56 : f32 to vector<2x256xf32>
    %269 = arith.mulf %268, %267 : vector<2x256xf32>
    %cst_57 = arith.constant 5.000000e-01 : f32
    %270 = vector.broadcast %cst_57 : f32 to vector<2x256xf32>
    %271 = arith.addf %269, %270 : vector<2x256xf32>
    %272 = arith.select %5, %267, %271 : vector<2x256xi1>, vector<2x256xf32>
    %273 = vector.extract_strided_slice %272 {offsets = [0, 0], sizes = [2, 64], strides = [1, 1]} : vector<2x256xf32> to vector<2x64xf32>
    %274 = vector.extract_strided_slice %272 {offsets = [0, 64], sizes = [2, 64], strides = [1, 1]} : vector<2x256xf32> to vector<2x64xf32>
    %275 = vector.extract_strided_slice %272 {offsets = [0, 128], sizes = [2, 64], strides = [1, 1]} : vector<2x256xf32> to vector<2x64xf32>
    %276 = vector.extract_strided_slice %272 {offsets = [0, 192], sizes = [2, 64], strides = [1, 1]} : vector<2x256xf32> to vector<2x64xf32>
    %277 = arith.mulf %274, %257 : vector<2x64xf32>
    %278 = arith.mulf %273, %275 : vector<2x64xf32>
    %279 = arith.addf %277, %278 : vector<2x64xf32>
    %280 = math.tanh %279 : vector<2x64xf32>
    %281 = arith.mulf %276, %280 : vector<2x64xf32>
    %282 = arith.maximumf %260, %281 : vector<2x64xf32>
    %283 = vector.extract_strided_slice %213 {offsets = [6, 0], sizes = [2, 256], strides = [1, 1]} : vector<16x256xf32> to vector<2x256xf32>
    %cst_58 = arith.constant dense<0.000000e+00> : vector<2x256xf32>
    %284 = tpu.matmul %281, %209, %cst_58 {dimension_numbers = #tpu.dot_dimension_numbers<[1], [0], [0], [1], [0, 0, 1, 1], [], []>} : vector<2x64xf32>, vector<64x256xf32>, vector<2x256xf32> -> vector<2x256xf32>
    %285 = arith.addf %283, %284 : vector<2x256xf32>
    %cst_59 = arith.constant 5.000000e-01 : f32
    %286 = vector.broadcast %cst_59 : f32 to vector<2x256xf32>
    %287 = arith.mulf %286, %285 : vector<2x256xf32>
    %288 = arith.select %5, %285, %287 : vector<2x256xi1>, vector<2x256xf32>
    %289 = math.tanh %288 : vector<2x256xf32>
    %cst_60 = arith.constant 5.000000e-01 : f32
    %290 = vector.broadcast %cst_60 : f32 to vector<2x256xf32>
    %291 = arith.mulf %290, %289 : vector<2x256xf32>
    %cst_61 = arith.constant 5.000000e-01 : f32
    %292 = vector.broadcast %cst_61 : f32 to vector<2x256xf32>
    %293 = arith.addf %291, %292 : vector<2x256xf32>
    %294 = arith.select %5, %289, %293 : vector<2x256xi1>, vector<2x256xf32>
    %295 = vector.extract_strided_slice %294 {offsets = [0, 0], sizes = [2, 64], strides = [1, 1]} : vector<2x256xf32> to vector<2x64xf32>
    %296 = vector.extract_strided_slice %294 {offsets = [0, 64], sizes = [2, 64], strides = [1, 1]} : vector<2x256xf32> to vector<2x64xf32>
    %297 = vector.extract_strided_slice %294 {offsets = [0, 128], sizes = [2, 64], strides = [1, 1]} : vector<2x256xf32> to vector<2x64xf32>
    %298 = vector.extract_strided_slice %294 {offsets = [0, 192], sizes = [2, 64], strides = [1, 1]} : vector<2x256xf32> to vector<2x64xf32>
    %299 = arith.mulf %296, %279 : vector<2x64xf32>
    %300 = arith.mulf %295, %297 : vector<2x64xf32>
    %301 = arith.addf %299, %300 : vector<2x64xf32>
    %302 = math.tanh %301 : vector<2x64xf32>
    %303 = arith.mulf %298, %302 : vector<2x64xf32>
    %304 = arith.maximumf %282, %303 : vector<2x64xf32>
    %305 = vector.extract_strided_slice %213 {offsets = [8, 0], sizes = [2, 256], strides = [1, 1]} : vector<16x256xf32> to vector<2x256xf32>
    %cst_62 = arith.constant dense<0.000000e+00> : vector<2x256xf32>
    %306 = tpu.matmul %303, %209, %cst_62 {dimension_numbers = #tpu.dot_dimension_numbers<[1], [0], [0], [1], [0, 0, 1, 1], [], []>} : vector<2x64xf32>, vector<64x256xf32>, vector<2x256xf32> -> vector<2x256xf32>
    %307 = arith.addf %305, %306 : vector<2x256xf32>
    %cst_63 = arith.constant 5.000000e-01 : f32
    %308 = vector.broadcast %cst_63 : f32 to vector<2x256xf32>
    %309 = arith.mulf %308, %307 : vector<2x256xf32>
    %310 = arith.select %5, %307, %309 : vector<2x256xi1>, vector<2x256xf32>
    %311 = math.tanh %310 : vector<2x256xf32>
    %cst_64 = arith.constant 5.000000e-01 : f32
    %312 = vector.broadcast %cst_64 : f32 to vector<2x256xf32>
    %313 = arith.mulf %312, %311 : vector<2x256xf32>
    %cst_65 = arith.constant 5.000000e-01 : f32
    %314 = vector.broadcast %cst_65 : f32 to vector<2x256xf32>
    %315 = arith.addf %313, %314 : vector<2x256xf32>
    %316 = arith.select %5, %311, %315 : vector<2x256xi1>, vector<2x256xf32>
    %317 = vector.extract_strided_slice %316 {offsets = [0, 0], sizes = [2, 64], strides = [1, 1]} : vector<2x256xf32> to vector<2x64xf32>
    %318 = vector.extract_strided_slice %316 {offsets = [0, 64], sizes = [2, 64], strides = [1, 1]} : vector<2x256xf32> to vector<2x64xf32>
    %319 = vector.extract_strided_slice %316 {offsets = [0, 128], sizes = [2, 64], strides = [1, 1]} : vector<2x256xf32> to vector<2x64xf32>
    %320 = vector.extract_strided_slice %316 {offsets = [0, 192], sizes = [2, 64], strides = [1, 1]} : vector<2x256xf32> to vector<2x64xf32>
    %321 = arith.mulf %318, %301 : vector<2x64xf32>
    %322 = arith.mulf %317, %319 : vector<2x64xf32>
    %323 = arith.addf %321, %322 : vector<2x64xf32>
    %324 = math.tanh %323 : vector<2x64xf32>
    %325 = arith.mulf %320, %324 : vector<2x64xf32>
    %326 = arith.maximumf %304, %325 : vector<2x64xf32>
    %327 = vector.extract_strided_slice %213 {offsets = [10, 0], sizes = [2, 256], strides = [1, 1]} : vector<16x256xf32> to vector<2x256xf32>
    %cst_66 = arith.constant dense<0.000000e+00> : vector<2x256xf32>
    %328 = tpu.matmul %325, %209, %cst_66 {dimension_numbers = #tpu.dot_dimension_numbers<[1], [0], [0], [1], [0, 0, 1, 1], [], []>} : vector<2x64xf32>, vector<64x256xf32>, vector<2x256xf32> -> vector<2x256xf32>
    %329 = arith.addf %327, %328 : vector<2x256xf32>
    %cst_67 = arith.constant 5.000000e-01 : f32
    %330 = vector.broadcast %cst_67 : f32 to vector<2x256xf32>
    %331 = arith.mulf %330, %329 : vector<2x256xf32>
    %332 = arith.select %5, %329, %331 : vector<2x256xi1>, vector<2x256xf32>
    %333 = math.tanh %332 : vector<2x256xf32>
    %cst_68 = arith.constant 5.000000e-01 : f32
    %334 = vector.broadcast %cst_68 : f32 to vector<2x256xf32>
    %335 = arith.mulf %334, %333 : vector<2x256xf32>
    %cst_69 = arith.constant 5.000000e-01 : f32
    %336 = vector.broadcast %cst_69 : f32 to vector<2x256xf32>
    %337 = arith.addf %335, %336 : vector<2x256xf32>
    %338 = arith.select %5, %333, %337 : vector<2x256xi1>, vector<2x256xf32>
    %339 = vector.extract_strided_slice %338 {offsets = [0, 0], sizes = [2, 64], strides = [1, 1]} : vector<2x256xf32> to vector<2x64xf32>
    %340 = vector.extract_strided_slice %338 {offsets = [0, 64], sizes = [2, 64], strides = [1, 1]} : vector<2x256xf32> to vector<2x64xf32>
    %341 = vector.extract_strided_slice %338 {offsets = [0, 128], sizes = [2, 64], strides = [1, 1]} : vector<2x256xf32> to vector<2x64xf32>
    %342 = vector.extract_strided_slice %338 {offsets = [0, 192], sizes = [2, 64], strides = [1, 1]} : vector<2x256xf32> to vector<2x64xf32>
    %343 = arith.mulf %340, %323 : vector<2x64xf32>
    %344 = arith.mulf %339, %341 : vector<2x64xf32>
    %345 = arith.addf %343, %344 : vector<2x64xf32>
    %346 = math.tanh %345 : vector<2x64xf32>
    %347 = arith.mulf %342, %346 : vector<2x64xf32>
    %348 = arith.maximumf %326, %347 : vector<2x64xf32>
    %349 = vector.extract_strided_slice %213 {offsets = [12, 0], sizes = [2, 256], strides = [1, 1]} : vector<16x256xf32> to vector<2x256xf32>
    %cst_70 = arith.constant dense<0.000000e+00> : vector<2x256xf32>
    %350 = tpu.matmul %347, %209, %cst_70 {dimension_numbers = #tpu.dot_dimension_numbers<[1], [0], [0], [1], [0, 0, 1, 1], [], []>} : vector<2x64xf32>, vector<64x256xf32>, vector<2x256xf32> -> vector<2x256xf32>
    %351 = arith.addf %349, %350 : vector<2x256xf32>
    %cst_71 = arith.constant 5.000000e-01 : f32
    %352 = vector.broadcast %cst_71 : f32 to vector<2x256xf32>
    %353 = arith.mulf %352, %351 : vector<2x256xf32>
    %354 = arith.select %5, %351, %353 : vector<2x256xi1>, vector<2x256xf32>
    %355 = math.tanh %354 : vector<2x256xf32>
    %cst_72 = arith.constant 5.000000e-01 : f32
    %356 = vector.broadcast %cst_72 : f32 to vector<2x256xf32>
    %357 = arith.mulf %356, %355 : vector<2x256xf32>
    %cst_73 = arith.constant 5.000000e-01 : f32
    %358 = vector.broadcast %cst_73 : f32 to vector<2x256xf32>
    %359 = arith.addf %357, %358 : vector<2x256xf32>
    %360 = arith.select %5, %355, %359 : vector<2x256xi1>, vector<2x256xf32>
    %361 = vector.extract_strided_slice %360 {offsets = [0, 0], sizes = [2, 64], strides = [1, 1]} : vector<2x256xf32> to vector<2x64xf32>
    %362 = vector.extract_strided_slice %360 {offsets = [0, 64], sizes = [2, 64], strides = [1, 1]} : vector<2x256xf32> to vector<2x64xf32>
    %363 = vector.extract_strided_slice %360 {offsets = [0, 128], sizes = [2, 64], strides = [1, 1]} : vector<2x256xf32> to vector<2x64xf32>
    %364 = vector.extract_strided_slice %360 {offsets = [0, 192], sizes = [2, 64], strides = [1, 1]} : vector<2x256xf32> to vector<2x64xf32>
    %365 = arith.mulf %362, %345 : vector<2x64xf32>
    %366 = arith.mulf %361, %363 : vector<2x64xf32>
    %367 = arith.addf %365, %366 : vector<2x64xf32>
    %368 = math.tanh %367 : vector<2x64xf32>
    %369 = arith.mulf %364, %368 : vector<2x64xf32>
    %370 = arith.maximumf %348, %369 : vector<2x64xf32>
    %371 = vector.extract_strided_slice %213 {offsets = [14, 0], sizes = [2, 256], strides = [1, 1]} : vector<16x256xf32> to vector<2x256xf32>
    %cst_74 = arith.constant dense<0.000000e+00> : vector<2x256xf32>
    %372 = tpu.matmul %369, %209, %cst_74 {dimension_numbers = #tpu.dot_dimension_numbers<[1], [0], [0], [1], [0, 0, 1, 1], [], []>} : vector<2x64xf32>, vector<64x256xf32>, vector<2x256xf32> -> vector<2x256xf32>
    %373 = arith.addf %371, %372 : vector<2x256xf32>
    %cst_75 = arith.constant 5.000000e-01 : f32
    %374 = vector.broadcast %cst_75 : f32 to vector<2x256xf32>
    %375 = arith.mulf %374, %373 : vector<2x256xf32>
    %376 = arith.select %5, %373, %375 : vector<2x256xi1>, vector<2x256xf32>
    %377 = math.tanh %376 : vector<2x256xf32>
    %cst_76 = arith.constant 5.000000e-01 : f32
    %378 = vector.broadcast %cst_76 : f32 to vector<2x256xf32>
    %379 = arith.mulf %378, %377 : vector<2x256xf32>
    %cst_77 = arith.constant 5.000000e-01 : f32
    %380 = vector.broadcast %cst_77 : f32 to vector<2x256xf32>
    %381 = arith.addf %379, %380 : vector<2x256xf32>
    %382 = arith.select %5, %377, %381 : vector<2x256xi1>, vector<2x256xf32>
    %383 = vector.extract_strided_slice %382 {offsets = [0, 0], sizes = [2, 64], strides = [1, 1]} : vector<2x256xf32> to vector<2x64xf32>
    %384 = vector.extract_strided_slice %382 {offsets = [0, 64], sizes = [2, 64], strides = [1, 1]} : vector<2x256xf32> to vector<2x64xf32>
    %385 = vector.extract_strided_slice %382 {offsets = [0, 128], sizes = [2, 64], strides = [1, 1]} : vector<2x256xf32> to vector<2x64xf32>
    %386 = vector.extract_strided_slice %382 {offsets = [0, 192], sizes = [2, 64], strides = [1, 1]} : vector<2x256xf32> to vector<2x64xf32>
    %387 = arith.mulf %384, %367 : vector<2x64xf32>
    %388 = arith.mulf %383, %385 : vector<2x64xf32>
    %389 = arith.addf %387, %388 : vector<2x64xf32>
    %390 = math.tanh %389 : vector<2x64xf32>
    %391 = arith.mulf %386, %390 : vector<2x64xf32>
    %392 = arith.maximumf %370, %391 : vector<2x64xf32>
    %c0_78 = arith.constant 0 : index
    %c0_79 = arith.constant 0 : index
    %393 = vector.load %arg0[%c0_78, %c0_79] : memref<16x64xf32, #tpu.memory_space<vmem>>, vector<16x32xf32>
    %394 = vector.extract_strided_slice %393 {offsets = [0, 0], sizes = [2, 32], strides = [1, 1]} : vector<16x32xf32> to vector<2x32xf32>
    %395 = vector.extract_strided_slice %393 {offsets = [2, 0], sizes = [2, 32], strides = [1, 1]} : vector<16x32xf32> to vector<2x32xf32>
    %396 = vector.extract_strided_slice %393 {offsets = [4, 0], sizes = [2, 32], strides = [1, 1]} : vector<16x32xf32> to vector<2x32xf32>
    %397 = vector.extract_strided_slice %393 {offsets = [6, 0], sizes = [2, 32], strides = [1, 1]} : vector<16x32xf32> to vector<2x32xf32>
    %398 = vector.extract_strided_slice %393 {offsets = [8, 0], sizes = [2, 32], strides = [1, 1]} : vector<16x32xf32> to vector<2x32xf32>
    %399 = vector.extract_strided_slice %393 {offsets = [10, 0], sizes = [2, 32], strides = [1, 1]} : vector<16x32xf32> to vector<2x32xf32>
    %400 = vector.extract_strided_slice %393 {offsets = [12, 0], sizes = [2, 32], strides = [1, 1]} : vector<16x32xf32> to vector<2x32xf32>
    %401 = vector.extract_strided_slice %393 {offsets = [14, 0], sizes = [2, 32], strides = [1, 1]} : vector<16x32xf32> to vector<2x32xf32>
    %402 = arith.maximumf %394, %395 : vector<2x32xf32>
    %403 = arith.maximumf %396, %397 : vector<2x32xf32>
    %404 = arith.maximumf %398, %399 : vector<2x32xf32>
    %405 = arith.maximumf %400, %401 : vector<2x32xf32>
    %406 = arith.maximumf %402, %403 : vector<2x32xf32>
    %407 = arith.maximumf %404, %405 : vector<2x32xf32>
    %408 = arith.maximumf %406, %407 : vector<2x32xf32>
    %cst_80 = arith.constant 0.000000e+00 : f32
    %409 = vector.broadcast %cst_80 : f32 to vector<2x32xf32>
    %410 = arith.maximumf %408, %409 : vector<2x32xf32>
    %c0_81 = arith.constant 0 : index
    %c0_82 = arith.constant 0 : index
    %411 = vector.load %arg2[%c0_81, %c0_82] : memref<104x4xf32, #tpu.memory_space<vmem>>, vector<32x4xf32>
    %c32 = arith.constant 32 : index
    %c0_83 = arith.constant 0 : index
    %412 = vector.load %arg2[%c32, %c0_83] : memref<104x4xf32, #tpu.memory_space<vmem>>, vector<64x4xf32>
    %c96 = arith.constant 96 : index
    %c0_84 = arith.constant 0 : index
    %413 = vector.load %arg2[%c96, %c0_84] : memref<104x4xf32, #tpu.memory_space<vmem>>, vector<1x4xf32>
    %cst_85 = arith.constant dense<0.000000e+00> : vector<2x4xf32>
    %414 = tpu.matmul %410, %411, %cst_85 {dimension_numbers = #tpu.dot_dimension_numbers<[1], [0], [0], [1], [0, 0, 1, 1], [], []>} : vector<2x32xf32>, vector<32x4xf32>, vector<2x4xf32> -> vector<2x4xf32>
    %cst_86 = arith.constant dense<0.000000e+00> : vector<2x4xf32>
    %415 = tpu.matmul %392, %412, %cst_86 {dimension_numbers = #tpu.dot_dimension_numbers<[1], [0], [0], [1], [0, 0, 1, 1], [], []>} : vector<2x64xf32>, vector<64x4xf32>, vector<2x4xf32> -> vector<2x4xf32>
    %416 = arith.addf %414, %415 : vector<2x4xf32>
    %417 = vector.broadcast %413 : vector<1x4xf32> to vector<2x4xf32>
    %418 = arith.addf %416, %417 : vector<2x4xf32>
    %cst_87 = arith.constant dense<0xFF800000> : vector<2xf32>
    %419 = vector.multi_reduction <maximumf>, %418, %cst_87 [1] : vector<2x4xf32> to vector<2xf32>
    %420 = vector.shape_cast %419 : vector<2xf32> to vector<2x1xf32>
    %421 = vector.broadcast %420 : vector<2x1xf32> to vector<2x4xf32>
    %422 = arith.subf %418, %421 : vector<2x4xf32>
    %423 = math.exp %422 : vector<2x4xf32>
    %cst_88 = arith.constant dense<0.000000e+00> : vector<2xf32>
    %424 = vector.multi_reduction <add>, %423, %cst_88 [1] : vector<2x4xf32> to vector<2xf32>
    %425 = vector.shape_cast %424 : vector<2xf32> to vector<2x1xf32>
    %426 = vector.broadcast %425 : vector<2x1xf32> to vector<2x4xf32>
    %427 = arith.divf %423, %426 : vector<2x4xf32>
    %c0_89 = arith.constant 0 : index
    %c0_90 = arith.constant 0 : index
    %428 = vector.load %arg3[%c0_89, %c0_90] : memref<2x4xf32, #tpu.memory_space<vmem>>, vector<2x4xf32>
    tpu.vector_store %arg3[%c0_89, %c0_90], %427 {strides = array<i32>} : memref<2x4xf32, #tpu.memory_space<vmem>>, vector<2x4xf32>,
    return
  }
}

</mosaic_0001>

<bundles_post_ra>
// kernel: tpu_custom_call.1
= control target key start
LH: loop header
LB: loop body
LE: loop exit
PB: predicated region body
PF: predicated region fallthrough
CT: control target
= control target key end

     0   :  { %8 = vsyncpa [#allocation3], 0  ;;  %s3358_s0 = inlined_call_operand.vmem [shape: f32[16,64], index: 0, kind: input, shape index: {}]   ;;  %s3359_s1 = inlined_call_operand.hbm [shape: f32[336,256], index: 1, kind: input, shape index: {}]   ;;  %s3360_s2 = inlined_call_operand.vmem [shape: f32[104,4], index: 2, kind: input, shape index: {}]   ;;  %s3361_s3 = inlined_call_operand.hbm [shape: f32[2,4], index: 3, kind: output, shape index: {}]  }
   0x1   :  { %9 = vsyncpa [#allocation4], 0  ;;  %s2571_s12 = smov [#allocation2]  }
   0x2   :  { %s17_s13 = sshll.u32 %s2571_s12, 4  ;;  %s18_s13 = int_to_ptr.vmem [resolvable:$true] %s17_s13 }
   0x3   :  { %s2535_s14 = scalar_lea.vmem %s18_s13, 10752  ;;  %p2540_p1 = scmp.lt.s32.totalorder %s18_s13, %s18_s13 }
   0x4   :  { %p2536_p0 = scmp.ne.s32.totalorder %s18_s13, %s2535_s14  ;;  %p2541_p2 = scmp.lt.s32.totalorder %s2535_s14, %s2535_s14 }
   0x6   :  { %p2542_p3 = por %p2541_p2, %p2540_p1 }
   0x8   :  { %p2543_p4 = pnand %p2542_p3, %p2536_p0 }
   0xa   :  { %2546 = shalt.err (!%p2543_p4)
}
   0xb   :  { %s2572_s15 = smov 256   ;;  %s2573_s16 = smov 16  }
   0xc   :  { %23 = dma.hbm_to_vmem [thread:$0]  %s3359_s1, 10752, %s18_s13, [#allocation3], %s2572_s15, %s2572_s15, %s2573_s16  }
   0xd   :  { %2567 = dma.done.wait [#allocation3], 10752  }
   0xe   :  { %2568 = vsyncadd [#allocation3], 4294956544  ;;  %v2574_v0 = vmov 0.0   ;;  %v55_v1 = vld [vmem:[#allocation2 + $0x78] sm:$0xff]  ;;  %v54_v3 = vld [vmem:[#allocation2 + $0x70] sm:$0xff]  ;;  %vm85_vm0 = vcmask 523264   ;;  %v29_v34 = vlaneseq }
   0xf   :  { %156 = vmatprep.mubr.f32.mxu0 %v2574_v0  ;;  %236 = vmatprep.mubr.f32.mxu1 %v2574_v0  ;;  %v2603_v2 = vld [vmem:[#allocation2 + $0xf8] sm:$0xff]  ;;  %v2606_v4 = vld [vmem:[#allocation2 + $0xf0] sm:$0xff]  ;;  %v53_v5 = vld [vmem:[#allocation2 + $0x68] sm:$0xff]  ;;  %s2575_s20 = smov 64   ;;  %vm1028_vm2 = vcmask 261120   ;;  %vm1031_vm3 = vcmask 785408  }
  0x10   :  { %108 = vmatprep.subr.mxu0 %v55_v1  ;;  %188 = vmatprep.subr.mxu1 %v2603_v2  ;;  %v2608_v6 = vld [vmem:[#allocation2 + $0xe8] sm:$0xff]  ;;  %v52_v7 = vld [vmem:[#allocation2 + $0x60] sm:$0xff]  ;;  %v51_v9 = vld [vmem:[#allocation2 + $0x58] sm:$0xff]  ;;  %v2695_v35 = vshrl.u32 %v29_v34, 7  ;;  %v30_v40 = vand.u32 127, %v29_v34  ;;  %vm1105_vm4 = vcmask 1041408  }
  0x11   :  { %109 = vmatpush1.msra.mxu0 %v54_v3  ;;  %189 = vmatpush1.msra.mxu1 %v2606_v4  ;;  %v2611_v8 = vld [vmem:[#allocation2 + $0xe0] sm:$0xff]  ;;  %v2614_v10 = vld [vmem:[#allocation2 + $0xd8] sm:$0xff]  ;;  %v50_v11 = vld [vmem:[#allocation2 + $0x50] sm:$0xff]  ;;  %vm1107_vm5 = vcmask 1043456   ;;  %vm1109_vm6 = vcmask 1045504   ;;  %vm2576_vm7 = vmmov 0  }
  0x12   :  { %110 = vmatprep.subr.mxu0 %v53_v5  ;;  %190 = vmatprep.subr.mxu1 %v2608_v6  ;;  %v2616_v12 = vld [vmem:[#allocation2 + $0xd0] sm:$0xff]  ;;  %v49_v13 = vld [vmem:[#allocation2 + $0x48] sm:$0xff]  ;;  %v48_v15 = vld [vmem:[#allocation2 + $0x40] sm:$0xff]  ;;  %v77_v36 = vsub.s32 0, %v2695_v35  ;;  %v81_v38 = vsub.s32 1, %v2695_v35  ;;  %v2710_v45 = vadd.s32 128, %v30_v40 }
  0x13   :  { %111 = vmatpush1.msra.mxu0 %v52_v7  ;;  %191 = vmatpush1.msra.mxu1 %v2611_v8  ;;  %v2619_v14 = vld [vmem:[#allocation2 + $0xc8] sm:$0xff]  ;;  %v2622_v16 = vld [vmem:[#allocation2 + $0xc0] sm:$0xff]  ;;  %v47_v17 = vld [vmem:[#allocation2 + $0x38] sm:$0xff]  ;;  %vm2299_vm8 = vcmask 25600  }
  0x14   :  { %112 = vmatprep.subr.mxu0 %v51_v9  ;;  %192 = vmatprep.subr.mxu1 %v2614_v10  ;;  %v2625_v18 = vld [vmem:[#allocation2 + $0xb8] sm:$0xff]  ;;  %v46_v19 = vld [vmem:[#allocation2 + $0x30] sm:$0xff]  ;;  %v45_v21 = vld [vmem:[#allocation2 + $0x28] sm:$0xff]  ;;  %vm35_vm1 = vcmp.lt.s32.totalorder %v2710_v45, 192 }
  0x15   :  { %113 = vmatpush1.msra.mxu0 %v50_v11  ;;  %193 = vmatpush1.msra.mxu1 %v2616_v12  ;;  %v2628_v20 = vld [vmem:[#allocation2 + $0xb0] sm:$0xff]  ;;  %v2631_v22 = vld [vmem:[#allocation2 + $0xa8] sm:$0xff]  ;;  %v44_v23 = vld [vmem:[#allocation2 + $0x20] sm:$0xff] }
  0x16   :  { %114 = vmatprep.subr.mxu0 %v49_v13  ;;  %194 = vmatprep.subr.mxu1 %v2619_v14  ;;  %v2634_v24 = vld [vmem:[#allocation2 + $0xa0] sm:$0xff]  ;;  %v43_v25 = vld [vmem:[#allocation2 + $0x18] sm:$0xff]  ;;  %v42_v27 = vld [vmem:[#allocation2 + $0x10] sm:$0xff] }
  0x17   :  { %115 = vmatpush1.msra.mxu0 %v48_v15  ;;  %195 = vmatpush1.msra.mxu1 %v2622_v16  ;;  %v2637_v26 = vld [vmem:[#allocation2 + $0x98] sm:$0xff]  ;;  %v2640_v28 = vld [vmem:[#allocation2 + $0x90] sm:$0xff]  ;;  %v41_v29 = vld [vmem:[#allocation2 + $0x8] sm:$0xff] }
  0x18   :  { %116 = vmatprep.subr.mxu0 %v47_v17  ;;  %196 = vmatprep.subr.mxu1 %v2625_v18  ;;  %v2643_v30 = vld [vmem:[#allocation2 + $0x88] sm:$0xff]  ;;  %v40_v31 = vld [vmem:[#allocation2] sm:$0xff] }
  0x19   :  { %117 = vmatpush1.msra.mxu0 %v46_v19  ;;  %197 = vmatpush1.msra.mxu1 %v2628_v20  ;;  %v2646_v32 = vld [vmem:[#allocation2 + $0x80] sm:$0xff]  ;;  %v39_v1 = vld [vmem:[%s3358_s0 + $0x8] sm:$0xff] }
  0x1a   :  { %118 = vmatprep.subr.mxu0 %v45_v21  ;;  %198 = vmatprep.subr.mxu1 %v2631_v22  ;;  %v2652_v33 = vld [vmem:[%s3358_s0] sm:$0xff]  ;;  %v2120_v5 = vrot.slane %v39_v1, 2  ;;  %v2142_v45 = vld [vmem:[%s3360_s2 + $0x48] sm:$0xff] }
  0x1b   :  { %119 = vmatpush1.msra.mxu0 %v44_v23  ;;  %199 = vmatpush1.msra.mxu1 %v2634_v24  ;;  %v73_v37 = vld [vmem:[#allocation2 + $0x100] ss:$8 sm:$0x3]  ;;  %v2117_v61 = vrot.slane %v2652_v33, 2 }
  0x1c   :  { %120 = vmatprep.subr.mxu0 %v43_v25  ;;  %200 = vmatprep.subr.mxu1 %v2637_v26  ;;  %v2701_v39 = vrot.slane %v73_v37, %v77_v36  ;;  %v2705_v41 = vrot.slane %v73_v37, %v81_v38  ;;  %v2122_v7 = vmax.f32 %v39_v1, %v2120_v5 }
  0x1d   :  { %121 = vmatpush1.msra.mxu0 %v42_v27  ;;  %201 = vmatpush1.msra.mxu1 %v2640_v28  ;;  %v2119_v63 = vmax.f32 %v2652_v33, %v2117_v61 }
  0x1e   :  { %122 = vmatprep.subr.mxu0 %v41_v29  ;;  %202 = vmatprep.subr.mxu1 %v2643_v30  ;;  %v2128_v11 = vrot.slane %v2122_v7, 4 }
  0x1f   :  { %123 = vmatpush1.msra.mxu0 %v40_v31  ;;  %203 = vmatpush1.msra.mxu1 %v2646_v32  ;;  %v2124_v3 = vrot.slane %v2119_v63, 4 }
  0x20   :  { %2327 = vmatmul.mubr.msk.f32.vlgmr.msra.gmra.mxu0 %vm85_vm0, %v2652_v33  ;;  %237 = vmatmul.mubr.f32.vlgmr.msra.gmra.mxu1 %v2574_v0  ;;  %v2732_v13 = vmax.f32 %v2122_v7, %v2128_v11 }
  0x21   :  { %287 = vmatprep.subr.mxu0 %v2603_v2  ;;  %162 = vmatprep.mubr.f32.mxu0 %v2574_v0  ;;  %v2730_v9 = vmax.f32 %v2119_v63, %v2124_v3 }
  0x22   :  { %288 = vmatpush1.msra.mxu0 %v2606_v4  ;;  %396 = vmatprep.subr.mxu1 %v2603_v2 }
  0x23   :  { %289 = vmatprep.subr.mxu0 %v2608_v6  ;;  %397 = vmatpush1.msra.mxu1 %v2606_v4  ;;  %v2131_v15 = vmax.f32 %v2730_v9, %v2732_v13  ;;  %v2139_v9 = vld [vmem:[%s3360_s2 + $0x30] sm:$0xff]  ;;  %v2138_v13 = vld [vmem:[%s3360_s2 + $0x28] sm:$0xff] }
  0x24   :  { %290 = vmatpush1.msra.mxu0 %v2611_v8  ;;  %398 = vmatprep.subr.mxu1 %v2608_v6 }
  0x25   :  { %291 = vmatprep.subr.mxu0 %v2614_v10  ;;  %399 = vmatpush1.msra.mxu1 %v2611_v8 }
  0x26   :  { %292 = vmatpush1.msra.mxu0 %v2616_v12  ;;  %400 = vmatprep.subr.mxu1 %v2614_v10 }
  0x27   :  { %293 = vmatprep.subr.mxu0 %v2619_v14  ;;  %401 = vmatpush1.msra.mxu1 %v2616_v12 }
  0x28   :  { %294 = vmatpush1.msra.mxu0 %v2622_v16  ;;  %402 = vmatprep.subr.mxu1 %v2619_v14 }
  0x29   :  { %295 = vmatprep.subr.mxu0 %v2625_v18  ;;  %403 = vmatpush1.msra.mxu1 %v2622_v16 }
  0x2a   :  { %296 = vmatpush1.msra.mxu0 %v2628_v20  ;;  %404 = vmatprep.subr.mxu1 %v2625_v18 }
  0x2b   :  { %297 = vmatprep.subr.mxu0 %v2631_v22  ;;  %405 = vmatpush1.msra.mxu1 %v2628_v20 }
  0x2c   :  { %298 = vmatpush1.msra.mxu0 %v2634_v24  ;;  %406 = vmatprep.subr.mxu1 %v2631_v22 }
  0x2d   :  { %299 = vmatprep.subr.mxu0 %v2637_v26  ;;  %407 = vmatpush1.msra.mxu1 %v2634_v24 }
  0x2e   :  { %300 = vmatpush1.msra.mxu0 %v2640_v28  ;;  %408 = vmatprep.subr.mxu1 %v2637_v26 }
  0x2f   :  { %301 = vmatprep.subr.mxu0 %v2643_v30  ;;  %409 = vmatpush1.msra.mxu1 %v2640_v28 }
  0x30   :  { %302 = vmatpush1.msra.mxu0 %v2646_v32  ;;  %410 = vmatprep.subr.mxu1 %v2643_v30 }
  0x31   :  { %411 = vmatpush1.msra.mxu1 %v2646_v32  ;;  %444 = vmatprep.mubr.f32.mxu1 %v2574_v0 }
  0x32   :  { %505 = vmatprep.subr.mxu0 %v2603_v2  ;;  %614 = vmatprep.subr.mxu1 %v2603_v2 }
  0x33   :  { %2328 = vmatmul.mubr.msk.f32.gmra.mxu0 %vm85_vm0, %v39_v1 }
  0x34   :  { %335 = vmatprep.mubr.f32.mxu0 %v2574_v0 }
  0xe0   :  { %v158_v42 = vpop.f32.mrf.mxu0  ;;  %v238_v43 = vpop.f32.mrf.mxu1 }
  0xe1   :  { %v2708_v44 = vadd.f32 %v158_v42, %v2701_v39 }
  0xe2   :  { %v160_v46 = vpop.f32.mrf.mxu0  ;;  %v240_v49 = vpop.f32.mrf.mxu1 }
  0xe3   :  { %v243_v47 = vadd.f32 %v238_v43, %v2708_v44  ;;  %v2714_v48 = vadd.f32 %v160_v46, %v2705_v41 }
  0xe5   :  { %v245_v50 = vmul.f32 0.5, %v243_v47  ;;  %v244_v51 = vadd.f32 %v240_v49, %v2714_v48 }
  0xe7   :  { %2427 = vtanh.f32 %v245_v50  ;;  %v246_v52 = vmul.f32 0.5, %v244_v51 }
  0xe9   :  { %v248_v53 = vsel %vm35_vm1, %v244_v51, %v246_v52 }
  0xea   :  { %2429 = vtanh.f32 %v248_v53 }
  0xf3   :  { %v2761_v29 = vpop.f32.mrf.mxu0 }
  0xf4   :  { %v2428_v54 = vpop.eup %2427 }
  0xf5   :  { %v251_v56 = vmul.f32 0.5, %v2428_v54  ;;  %v2763_v31 = vpop.f32.mrf.mxu0 }
  0xf7   :  { %v2430_v55 = vpop.eup %2429  ;;  %v253_v59 = vadd.f32 0.5, %v251_v56 }
  0xf8   :  { %v252_v57 = vmul.f32 0.5, %v2430_v55 }
  0xf9   :  { %v257_v17 = vmul.f32 0.0, %v253_v59 }
  0xfa   :  { %v254_v58 = vadd.f32 0.5, %v252_v57 }
  0xfc   :  { %v256_v60 = vsel %vm35_vm1, %v2430_v55, %v254_v58 }
  0xfd   :  { %v258_v62 = vmul.f32 %v256_v60, %v253_v59 }
  0xff   :  { %260 = vrot.lane.b32.xlu0 %v258_v62, %s2575_s20 }
 0x171   :  { %v261_v19 = vpop.permute.xlu0 %260 }
 0x172   :  { %v263_v21 = vadd.f32 %v261_v19, %v257_v17 }
 0x174   :  { %2431 = vtanh.f32 %v263_v21  ;;  %v363_v53 = vrot.slane %v263_v21, 6 }
 0x181   :  { %v2432_v23 = vpop.eup %2431 }
 0x182   :  { %v2736_v25 = vmul.f32 %v2432_v23, %v256_v60 }
 0x184   :  { %267 = vrot.lane.b32.xlu0 %v2736_v25, %s2575_s20 }
 0x1f6   :  { %v2740_v27 = vpop.permute.xlu0 %267 }
 0x1f7   :  { %2329 = vmatmul.mubr.msk.f32.vlgmr.msra.gmra.mxu0 %vm85_vm0, %v2740_v27 }
 0x1f8   :  { %506 = vmatpush1.msra.mxu0 %v2606_v4  ;;  %553 = vmatprep.mubr.f32.mxu0 %v2574_v0 }
 0x1f9   :  { %507 = vmatprep.subr.mxu0 %v2608_v6 }
 0x1fa   :  { %508 = vmatpush1.msra.mxu0 %v2611_v8 }
 0x1fb   :  { %509 = vmatprep.subr.mxu0 %v2614_v10 }
 0x1fc   :  { %510 = vmatpush1.msra.mxu0 %v2616_v12 }
 0x1fd   :  { %511 = vmatprep.subr.mxu0 %v2619_v14 }
 0x1fe   :  { %512 = vmatpush1.msra.mxu0 %v2622_v16 }
 0x1ff   :  { %513 = vmatprep.subr.mxu0 %v2625_v18 }
 0x200   :  { %514 = vmatpush1.msra.mxu0 %v2628_v20 }
 0x201   :  { %515 = vmatprep.subr.mxu0 %v2631_v22 }
 0x202   :  { %516 = vmatpush1.msra.mxu0 %v2634_v24 }
 0x203   :  { %517 = vmatprep.subr.mxu0 %v2637_v26 }
 0x204   :  { %518 = vmatpush1.msra.mxu0 %v2640_v28 }
 0x205   :  { %519 = vmatprep.subr.mxu0 %v2643_v30 }
 0x206   :  { %520 = vmatpush1.msra.mxu0 %v2646_v32 }
 0x207   :  { %716 = vmatprep.subr.mxu0 %v2603_v2 }
 0x2b7   :  { %v337_v33 = vpop.f32.mrf.mxu0 }
 0x2b8   :  { %v344_v34 = vrot.slane %v337_v33, 6 }
 0x2b9   :  { %v339_v37 = vpop.f32.mrf.mxu0 }
 0x2ba   :  { %v348_v40 = vadd.f32 %v344_v34, %v2708_v44  ;;  %v345_v42 = vrot.slane %v339_v37, 6 }
 0x2bc   :  { %v350_v43 = vmul.f32 0.5, %v348_v40  ;;  %v349_v46 = vadd.f32 %v345_v42, %v2714_v48 }
 0x2be   :  { %2433 = vtanh.f32 %v350_v43  ;;  %v351_v47 = vmul.f32 0.5, %v349_v46 }
 0x2c0   :  { %v353_v49 = vsel %vm35_vm1, %v349_v46, %v351_v47 }
 0x2c1   :  { %2435 = vtanh.f32 %v353_v49 }
 0x2cb   :  { %v2434_v50 = vpop.eup %2433 }
 0x2cc   :  { %v356_v51 = vmul.f32 0.5, %v2434_v50 }
 0x2ce   :  { %v2436_v52 = vpop.eup %2435  ;;  %v358_v54 = vadd.f32 0.5, %v356_v51 }
 0x2cf   :  { %v357_v55 = vmul.f32 0.5, %v2436_v52 }
 0x2d0   :  { %v365_v56 = vmul.f32 %v363_v53, %v358_v54 }
 0x2d1   :  { %v359_v57 = vadd.f32 0.5, %v357_v55 }
 0x2d3   :  { %v361_v58 = vsel %vm35_vm1, %v2436_v52, %v359_v57 }
 0x2d4   :  { %v366_v59 = vmul.f32 %v361_v58, %v358_v54 }
 0x2d6   :  { %368 = vrot.lane.b32.xlu1 %v366_v59, %s2575_s20 }
 0x348   :  { %v369_v60 = vpop.permute.xlu1 %368 }
 0x349   :  { %v371_v61 = vadd.f32 %v369_v60, %v365_v56 }
 0x34b   :  { %2437 = vtanh.f32 %v371_v61  ;;  %v472_v43 = vrot.slane %v371_v61, 6 }
 0x358   :  { %v2438_v62 = vpop.eup %2437 }
 0x359   :  { %v2772_v63 = vmul.f32 %v2438_v62, %v361_v58 }
 0x35b   :  { %v375_v1 = vrot.slane %v2772_v63, 2 }
 0x35d   :  { %376 = vrot.lane.b32.xlu1 %v375_v1, %s2575_s20 }
 0x3cf   :  { %v377_v3 = vpop.permute.xlu1 %376 }
 0x3d0   :  { %2330 = vmatmul.mubr.msk.f32.vlgmr.msra.gmra.mxu1 %vm85_vm0, %v377_v3 }
 0x3d1   :  { %615 = vmatpush1.msra.mxu1 %v2606_v4  ;;  %662 = vmatprep.mubr.f32.mxu1 %v2574_v0 }
 0x3d2   :  { %616 = vmatprep.subr.mxu1 %v2608_v6 }
 0x3d3   :  { %617 = vmatpush1.msra.mxu1 %v2611_v8 }
 0x3d4   :  { %618 = vmatprep.subr.mxu1 %v2614_v10 }
 0x3d5   :  { %619 = vmatpush1.msra.mxu1 %v2616_v12 }
 0x3d6   :  { %620 = vmatprep.subr.mxu1 %v2619_v14 }
 0x3d7   :  { %621 = vmatpush1.msra.mxu1 %v2622_v16 }
 0x3d8   :  { %622 = vmatprep.subr.mxu1 %v2625_v18 }
 0x3d9   :  { %623 = vmatpush1.msra.mxu1 %v2628_v20 }
 0x3da   :  { %624 = vmatprep.subr.mxu1 %v2631_v22 }
 0x3db   :  { %625 = vmatpush1.msra.mxu1 %v2634_v24 }
 0x3dc   :  { %626 = vmatprep.subr.mxu1 %v2637_v26 }
 0x3dd   :  { %627 = vmatpush1.msra.mxu1 %v2640_v28 }
 0x3de   :  { %628 = vmatprep.subr.mxu1 %v2643_v30 }
 0x3df   :  { %629 = vmatpush1.msra.mxu1 %v2646_v32 }
 0x3e0   :  { %825 = vmatprep.subr.mxu1 %v2603_v2 }
 0x490   :  { %v446_v5 = vpop.f32.mrf.mxu1 }
 0x491   :  { %v453_v7 = vrot.slane %v446_v5, 4 }
 0x492   :  { %v448_v11 = vpop.f32.mrf.mxu1 }
 0x493   :  { %v457_v17 = vadd.f32 %v453_v7, %v2708_v44  ;;  %v454_v19 = vrot.slane %v448_v11, 4 }
 0x495   :  { %v459_v21 = vmul.f32 0.5, %v457_v17  ;;  %v458_v23 = vadd.f32 %v454_v19, %v2714_v48 }
 0x497   :  { %2439 = vtanh.f32 %v459_v21  ;;  %v460_v33 = vmul.f32 0.5, %v458_v23 }
 0x499   :  { %v462_v34 = vsel %vm35_vm1, %v458_v23, %v460_v33 }
 0x49a   :  { %2441 = vtanh.f32 %v462_v34 }
 0x4a4   :  { %v2440_v37 = vpop.eup %2439 }
 0x4a5   :  { %v465_v40 = vmul.f32 0.5, %v2440_v37 }
 0x4a7   :  { %v2442_v42 = vpop.eup %2441  ;;  %v467_v46 = vadd.f32 0.5, %v465_v40 }
 0x4a8   :  { %v466_v47 = vmul.f32 0.5, %v2442_v42 }
 0x4a9   :  { %v474_v49 = vmul.f32 %v472_v43, %v467_v46 }
 0x4aa   :  { %v468_v50 = vadd.f32 0.5, %v466_v47 }
 0x4ac   :  { %v470_v51 = vsel %vm35_vm1, %v2442_v42, %v468_v50  ;;  %v2858_v50 = vadd.f32 %v2761_v29, %v2701_v39 }
 0x4ad   :  { %v475_v52 = vmul.f32 %v470_v51, %v467_v46 }
 0x4af   :  { %477 = vrot.lane.b32.xlu0 %v475_v52, %s2575_s20  ;;  %v2862_v52 = vadd.f32 %v2763_v31, %v2705_v41 }
 0x521   :  { %v478_v53 = vpop.permute.xlu0 %477 }
 0x522   :  { %v480_v54 = vadd.f32 %v478_v53, %v474_v49 }
 0x524   :  { %2443 = vtanh.f32 %v480_v54  ;;  %v581_v23 = vrot.slane %v480_v54, 6 }
 0x531   :  { %v2444_v55 = vpop.eup %2443 }
 0x532   :  { %v2801_v56 = vmul.f32 %v2444_v55, %v470_v51 }
 0x534   :  { %v484_v57 = vrot.slane %v2801_v56, 4 }
 0x536   :  { %485 = vrot.lane.b32.xlu1 %v484_v57, %s2575_s20 }
 0x5a8   :  { %v486_v58 = vpop.permute.xlu1 %485 }
 0x5a9   :  { %2331 = vmatmul.mubr.msk.f32.vlgmr.msra.gmra.mxu0 %vm85_vm0, %v486_v58 }
 0x5aa   :  { %717 = vmatpush1.msra.mxu0 %v2606_v4  ;;  %764 = vmatprep.mubr.f32.mxu0 %v2574_v0 }
 0x5ab   :  { %718 = vmatprep.subr.mxu0 %v2608_v6 }
 0x5ac   :  { %719 = vmatpush1.msra.mxu0 %v2611_v8 }
 0x5ad   :  { %720 = vmatprep.subr.mxu0 %v2614_v10 }
 0x5ae   :  { %721 = vmatpush1.msra.mxu0 %v2616_v12 }
 0x5af   :  { %722 = vmatprep.subr.mxu0 %v2619_v14 }
 0x5b0   :  { %723 = vmatpush1.msra.mxu0 %v2622_v16 }
 0x5b1   :  { %724 = vmatprep.subr.mxu0 %v2625_v18 }
 0x5b2   :  { %725 = vmatpush1.msra.mxu0 %v2628_v20 }
 0x5b3   :  { %726 = vmatprep.subr.mxu0 %v2631_v22 }
 0x5b4   :  { %727 = vmatpush1.msra.mxu0 %v2634_v24 }
 0x5b5   :  { %728 = vmatprep.subr.mxu0 %v2637_v26 }
 0x5b6   :  { %729 = vmatpush1.msra.mxu0 %v2640_v28 }
 0x5b7   :  { %730 = vmatprep.subr.mxu0 %v2643_v30 }
 0x5b8   :  { %731 = vmatpush1.msra.mxu0 %v2646_v32 }
 0x5b9   :  { %934 = vmatprep.subr.mxu0 %v2603_v2 }
 0x669   :  { %v555_v59 = vpop.f32.mrf.mxu0 }
 0x66a   :  { %v562_v60 = vrot.slane %v555_v59, 2 }
 0x66b   :  { %v557_v61 = vpop.f32.mrf.mxu0 }
 0x66c   :  { %v566_v62 = vadd.f32 %v562_v60, %v2708_v44  ;;  %v563_v1 = vrot.slane %v557_v61, 2 }
 0x66e   :  { %v568_v3 = vmul.f32 0.5, %v566_v62  ;;  %v567_v5 = vadd.f32 %v563_v1, %v2714_v48 }
 0x670   :  { %2445 = vtanh.f32 %v568_v3  ;;  %v569_v7 = vmul.f32 0.5, %v567_v5 }
 0x672   :  { %v571_v11 = vsel %vm35_vm1, %v567_v5, %v569_v7 }
 0x673   :  { %2447 = vtanh.f32 %v571_v11 }
 0x67d   :  { %v2446_v17 = vpop.eup %2445 }
 0x67e   :  { %v574_v19 = vmul.f32 0.5, %v2446_v17 }
 0x680   :  { %v2448_v21 = vpop.eup %2447  ;;  %v576_v2 = vadd.f32 0.5, %v574_v19 }
 0x681   :  { %v575_v33 = vmul.f32 0.5, %v2448_v21 }
 0x682   :  { %v583_v34 = vmul.f32 %v581_v23, %v576_v2 }
 0x683   :  { %v577_v37 = vadd.f32 0.5, %v575_v33 }
 0x685   :  { %v579_v44 = vsel %vm35_vm1, %v2448_v21, %v577_v37 }
 0x686   :  { %v584_v40 = vmul.f32 %v579_v44, %v576_v2 }
 0x688   :  { %586 = vrot.lane.b32.xlu0 %v584_v40, %s2575_s20 }
 0x6fa   :  { %v587_v48 = vpop.permute.xlu0 %586 }
 0x6fb   :  { %v589_v42 = vadd.f32 %v587_v48, %v583_v34 }
 0x6fd   :  { %2449 = vtanh.f32 %v589_v42  ;;  %v684_v61 = vrot.slane %v589_v42, 6 }
 0x70a   :  { %v2450_v43 = vpop.eup %2449 }
 0x70b   :  { %v2830_v46 = vmul.f32 %v2450_v43, %v579_v44 }
 0x70d   :  { %v593_v47 = vrot.slane %v2830_v46, 6 }
 0x70f   :  { %594 = vrot.lane.b32.xlu1 %v593_v47, %s2575_s20 }
 0x781   :  { %v2836_v49 = vpop.permute.xlu1 %594 }
 0x782   :  { %2332 = vmatmul.mubr.msk.f32.vlgmr.msra.gmra.mxu1 %vm85_vm0, %v2836_v49 }
 0x783   :  { %826 = vmatpush1.msra.mxu1 %v2606_v4  ;;  %873 = vmatprep.mubr.f32.mxu1 %v2574_v0 }
 0x784   :  { %827 = vmatprep.subr.mxu1 %v2608_v6 }
 0x785   :  { %828 = vmatpush1.msra.mxu1 %v2611_v8 }
 0x786   :  { %829 = vmatprep.subr.mxu1 %v2614_v10 }
 0x787   :  { %830 = vmatpush1.msra.mxu1 %v2616_v12 }
 0x788   :  { %831 = vmatprep.subr.mxu1 %v2619_v14 }
 0x789   :  { %832 = vmatpush1.msra.mxu1 %v2622_v16 }
 0x78a   :  { %833 = vmatprep.subr.mxu1 %v2625_v18 }
 0x78b   :  { %834 = vmatpush1.msra.mxu1 %v2628_v20 }
 0x78c   :  { %835 = vmatprep.subr.mxu1 %v2631_v22 }
 0x78d   :  { %836 = vmatpush1.msra.mxu1 %v2634_v24 }
 0x78e   :  { %837 = vmatprep.subr.mxu1 %v2637_v26 }
 0x78f   :  { %838 = vmatpush1.msra.mxu1 %v2640_v28 }
 0x790   :  { %839 = vmatprep.subr.mxu1 %v2643_v30 }
 0x791   :  { %840 = vmatpush1.msra.mxu1 %v2646_v32 }
 0x842   :  { %v664_v51 = vpop.f32.mrf.mxu1 }
 0x843   :  { %v669_v53 = vadd.f32 %v664_v51, %v2858_v50 }
 0x844   :  { %v666_v54 = vpop.f32.mrf.mxu1 }
 0x845   :  { %v671_v55 = vmul.f32 0.5, %v669_v53  ;;  %v670_v57 = vadd.f32 %v666_v54, %v2862_v52 }
 0x847   :  { %2451 = vtanh.f32 %v671_v55  ;;  %v672_v58 = vmul.f32 0.5, %v670_v57 }
 0x849   :  { %v674_v59 = vsel %vm35_vm1, %v670_v57, %v672_v58 }
 0x84a   :  { %2453 = vtanh.f32 %v674_v59 }
 0x854   :  { %v2452_v60 = vpop.eup %2451 }
 0x855   :  { %v677_v39 = vmul.f32 0.5, %v2452_v60 }
 0x857   :  { %v2454_v29 = vpop.eup %2453  ;;  %v679_v62 = vadd.f32 0.5, %v677_v39 }
 0x858   :  { %v678_v1 = vmul.f32 0.5, %v2454_v29 }
 0x859   :  { %v686_v41 = vmul.f32 %v684_v61, %v679_v62 }
 0x85a   :  { %v680_v31 = vadd.f32 0.5, %v678_v1 }
 0x85c   :  { %v682_v3 = vsel %vm35_vm1, %v2454_v29, %v680_v31 }
 0x85d   :  { %v687_v5 = vmul.f32 %v682_v3, %v679_v62 }
 0x85f   :  { %689 = vrot.lane.b32.xlu0 %v687_v5, %s2575_s20 }
 0x8d1   :  { %v690_v7 = vpop.permute.xlu0 %689 }
 0x8d2   :  { %v692_v11 = vadd.f32 %v690_v7, %v686_v41 }
 0x8d4   :  { %2455 = vtanh.f32 %v692_v11 }
 0x8e1   :  { %v2456_v17 = vpop.eup %2455 }
 0x8e2   :  { %v2871_v19 = vmul.f32 %v2456_v17, %v682_v3 }
 0x8e4   :  { %696 = vrot.lane.b32.xlu1 %v2871_v19, %s2575_s20 }
 0x956   :  { %v2875_v21 = vpop.permute.xlu1 %696 }
 0x957   :  { %2333 = vmatmul.mubr.msk.f32.vlgmr.msra.gmra.mxu0 %vm85_vm0, %v2875_v21 }
 0x958   :  { %935 = vmatpush1.msra.mxu0 %v2606_v4  ;;  %982 = vmatprep.mubr.f32.mxu0 %v2574_v0 }
 0x959   :  { %936 = vmatprep.subr.mxu0 %v2608_v6 }
 0x95a   :  { %937 = vmatpush1.msra.mxu0 %v2611_v8 }
 0x95b   :  { %938 = vmatprep.subr.mxu0 %v2614_v10 }
 0x95c   :  { %939 = vmatpush1.msra.mxu0 %v2616_v12 }
 0x95d   :  { %940 = vmatprep.subr.mxu0 %v2619_v14 }
 0x95e   :  { %941 = vmatpush1.msra.mxu0 %v2622_v16 }
 0x95f   :  { %942 = vmatprep.subr.mxu0 %v2625_v18 }
 0x960   :  { %943 = vmatpush1.msra.mxu0 %v2628_v20 }
 0x961   :  { %944 = vmatprep.subr.mxu0 %v2631_v22 }
 0x962   :  { %945 = vmatpush1.msra.mxu0 %v2634_v24 }
 0x963   :  { %946 = vmatprep.subr.mxu0 %v2637_v26 }
 0x964   :  { %947 = vmatpush1.msra.mxu0 %v2640_v28  ;;  %v792_v28 = vrot.slane %v692_v11, 6 }
 0x965   :  { %948 = vmatprep.subr.mxu0 %v2643_v30 }
 0x966   :  { %949 = vmatpush1.msra.mxu0 %v2646_v32 }
 0xa17   :  { %v766_v4 = vpop.f32.mrf.mxu0 }
 0xa18   :  { %v773_v6 = vrot.slane %v766_v4, 6 }
 0xa19   :  { %v768_v8 = vpop.f32.mrf.mxu0 }
 0xa1a   :  { %v777_v10 = vadd.f32 %v773_v6, %v2858_v50  ;;  %v774_v12 = vrot.slane %v768_v8, 6 }
 0xa1c   :  { %v779_v14 = vmul.f32 0.5, %v777_v10  ;;  %v778_v16 = vadd.f32 %v774_v12, %v2862_v52 }
 0xa1e   :  { %2457 = vtanh.f32 %v779_v14  ;;  %v780_v18 = vmul.f32 0.5, %v778_v16 }
 0xa20   :  { %v782_v20 = vsel %vm35_vm1, %v778_v16, %v780_v18 }
 0xa21   :  { %2459 = vtanh.f32 %v782_v20 }
 0xa2b   :  { %v2458_v22 = vpop.eup %2457 }
 0xa2c   :  { %v785_v24 = vmul.f32 0.5, %v2458_v22 }
 0xa2e   :  { %v2460_v26 = vpop.eup %2459  ;;  %v787_v30 = vadd.f32 0.5, %v785_v24 }
 0xa2f   :  { %v786_v32 = vmul.f32 0.5, %v2460_v26 }
 0xa30   :  { %v794_v23 = vmul.f32 %v792_v28, %v787_v30 }
 0xa31   :  { %v788_v2 = vadd.f32 0.5, %v786_v32 }
 0xa33   :  { %v790_v33 = vsel %vm35_vm1, %v2460_v26, %v788_v2 }
 0xa34   :  { %v795_v34 = vmul.f32 %v790_v33, %v787_v30 }
 0xa36   :  { %797 = vrot.lane.b32.xlu0 %v795_v34, %s2575_s20 }
 0xaa8   :  { %v798_v37 = vpop.permute.xlu0 %797 }
 0xaa9   :  { %v800_v44 = vadd.f32 %v798_v37, %v794_v23 }
 0xaab   :  { %2461 = vtanh.f32 %v800_v44  ;;  %v901_v1 = vrot.slane %v800_v44, 6 }
 0xab8   :  { %v2462_v40 = vpop.eup %2461 }
 0xab9   :  { %v2902_v48 = vmul.f32 %v2462_v40, %v790_v33 }
 0xabb   :  { %v804_v42 = vrot.slane %v2902_v48, 2 }
 0xabd   :  { %805 = vrot.lane.b32.xlu1 %v804_v42, %s2575_s20 }
 0xb2f   :  { %v806_v43 = vpop.permute.xlu1 %805 }
 0xb30   :  { %2334 = vmatmul.mubr.msk.f32.vlgmr.msra.gmra.mxu1 %vm85_vm0, %v806_v43 }
 0xb31   :  { %1239 = vmatprep.mubr.f32.mxu1 %v2574_v0 }
 0xbf0   :  { %v875_v51 = vpop.f32.mrf.mxu1 }
 0xbf1   :  { %v882_v53 = vrot.slane %v875_v51, 4  ;;  %v1058_v51 = vrot.slane %v2871_v19, 2 }
 0xbf2   :  { %v877_v54 = vpop.f32.mrf.mxu1 }
 0xbf3   :  { %v886_v55 = vadd.f32 %v882_v53, %v2858_v50  ;;  %v883_v57 = vrot.slane %v877_v54, 4  ;;  %v1145_v53 = vld [vmem:[#allocation2 + $0x208] sm:$0xff]  ;;  %v1144_v54 = vld [vmem:[#allocation2 + $0x200] sm:$0xff] }
 0xbf4   :  { %1175 = vmatprep.subr.mxu1 %v1145_v53 }
 0xbf5   :  { %v888_v58 = vmul.f32 0.5, %v886_v55  ;;  %v887_v59 = vadd.f32 %v883_v57, %v2862_v52  ;;  %v1143_v55 = vld [vmem:[#allocation2 + $0x1f8] sm:$0xff]  ;;  %v1142_v57 = vld [vmem:[#allocation2 + $0x1f0] sm:$0xff]  ;;  %1176 = vmatpush1.msra.mxu1 %v1144_v54  ;;  %v1117_v54 = vld [vmem:[#allocation2 + $0x128] sm:$0xff] }
 0xbf6   :  { %1177 = vmatprep.subr.mxu1 %v1143_v55  ;;  %v2979_v55 = vld [vmem:[#allocation2 + $0x228] sm:$0xff] }
 0xbf7   :  { %2463 = vtanh.f32 %v888_v58  ;;  %v889_v60 = vmul.f32 0.5, %v887_v59  ;;  %v1141_v58 = vld [vmem:[#allocation2 + $0x1e8] sm:$0xff]  ;;  %1178 = vmatpush1.msra.mxu1 %v1142_v57 }
 0xbf8   :  { %1179 = vmatprep.subr.mxu1 %v1141_v58  ;;  %v1116_v58 = vld [vmem:[#allocation2 + $0x120] sm:$0xff] }
 0xbf9   :  { %v891_v39 = vsel %vm35_vm1, %v887_v59, %v889_v60  ;;  %v1140_v59 = vld [vmem:[#allocation2 + $0x1e0] sm:$0xff]  ;;  %v1139_v60 = vld [vmem:[#allocation2 + $0x1d8] sm:$0xff] }
 0xbfa   :  { %2465 = vtanh.f32 %v891_v39  ;;  %v1138_v39 = vld [vmem:[#allocation2 + $0x1d0] sm:$0xff]  ;;  %1180 = vmatpush1.msra.mxu1 %v1140_v59  ;;  %v2985_v59 = vld [vmem:[#allocation2 + $0x220] sm:$0xff] }
 0xbfb   :  { %1181 = vmatprep.subr.mxu1 %v1139_v60  ;;  %v1115_v60 = vld [vmem:[#allocation2 + $0x118] sm:$0xff] }
 0xbfc   :  { %1182 = vmatpush1.msra.mxu1 %v1138_v39  ;;  %v2988_v39 = vld [vmem:[#allocation2 + $0x218] sm:$0xff] }
 0xc04   :  { %v2464_v29 = vpop.eup %2463 }
 0xc05   :  { %v894_v61 = vmul.f32 0.5, %v2464_v29  ;;  %v2942_v29 = vld [vmem:[#allocation2 + $0x288] sm:$0xff] }
 0xc06   :  { %1268 = vmatprep.subr.mxu0 %v2942_v29 }
 0xc07   :  { %v2466_v62 = vpop.eup %2465  ;;  %v896_v41 = vadd.f32 0.5, %v894_v61  ;;  %v1137_v61 = vld [vmem:[#allocation2 + $0x1c8] sm:$0xff] }
 0xc08   :  { %v895_v31 = vmul.f32 0.5, %v2466_v62  ;;  %1183 = vmatprep.subr.mxu1 %v1137_v61  ;;  %v1114_v61 = vld [vmem:[#allocation2 + $0x110] sm:$0xff] }
 0xc09   :  { %v903_v3 = vmul.f32 %v901_v1, %v896_v41  ;;  %v1136_v1 = vld [vmem:[#allocation2 + $0x1c0] sm:$0xff] }
 0xc0a   :  { %v897_v5 = vadd.f32 0.5, %v895_v31  ;;  %v2950_v31 = vld [vmem:[#allocation2 + $0x270] sm:$0xff]  ;;  %1184 = vmatpush1.msra.mxu1 %v1136_v1 }
 0xc0b   :  { %v2990_v1 = vld [vmem:[#allocation2 + $0x210] sm:$0xff] }
 0xc0c   :  { %v899_v7 = vsel %vm35_vm1, %v2466_v62, %v897_v5  ;;  %v2945_v62 = vld [vmem:[#allocation2 + $0x280] sm:$0xff]  ;;  %v2953_v5 = vld [vmem:[#allocation2 + $0x268] sm:$0xff] }
 0xc0d   :  { %v904_v11 = vmul.f32 %v899_v7, %v896_v41  ;;  %v2948_v41 = vld [vmem:[#allocation2 + $0x278] sm:$0xff] }
 0xc0f   :  { %906 = vrot.lane.b32.xlu0 %v904_v11, %s2575_s20  ;;  %v1133_v11 = vld [vmem:[#allocation2 + $0x1a8] sm:$0xff] }
 0xc81   :  { %v907_v17 = vpop.permute.xlu0 %906 }
 0xc82   :  { %v909_v4 = vadd.f32 %v907_v17, %v903_v3  ;;  %v1135_v3 = vld [vmem:[#allocation2 + $0x1b8] sm:$0xff]  ;;  %v1132_v17 = vld [vmem:[#allocation2 + $0x1a0] sm:$0xff] }
 0xc83   :  { %1185 = vmatprep.subr.mxu1 %v1135_v3 }
 0xc84   :  { %2467 = vtanh.f32 %v909_v4  ;;  %v1010_v33 = vrot.slane %v909_v4, 6  ;;  %v1131_v4 = vld [vmem:[#allocation2 + $0x198] sm:$0xff] }
 0xc91   :  { %v2468_v6 = vpop.eup %2467 }
 0xc92   :  { %v2915_v8 = vmul.f32 %v2468_v6, %v899_v7  ;;  %v1134_v7 = vld [vmem:[#allocation2 + $0x1b0] sm:$0xff] }
 0xc93   :  { %1186 = vmatpush1.msra.mxu1 %v1134_v7  ;;  %v1130_v6 = vld [vmem:[#allocation2 + $0x190] sm:$0xff]  ;;  %v1047_v7 = vrot.slane %v2902_v48, 6 }
 0xc94   :  { %v913_v10 = vrot.slane %v2915_v8, 4  ;;  %v1036_v42 = vrot.slane %v2915_v8, 2  ;;  %1187 = vmatprep.subr.mxu1 %v1133_v11 }
 0xc95   :  { %1188 = vmatpush1.msra.mxu1 %v1132_v17  ;;  %v2407_v11 = vpack.i.bf16 %v2830_v46, %v1047_v7 }
 0xc96   :  { %914 = vrot.lane.b32.xlu1 %v913_v10, %s2575_s20  ;;  %v2397_v43 = vpack.i.bf16 %v2801_v56, %v1036_v42  ;;  %v1129_v10 = vld [vmem:[#allocation2 + $0x188] sm:$0xff]  ;;  %1189 = vmatprep.subr.mxu1 %v1131_v4 }
 0xc97   :  { %1190 = vmatpush1.msra.mxu1 %v1130_v6 }
 0xc98   :  { %1191 = vmatprep.subr.mxu1 %v1129_v10 }
 0xd08   :  { %v915_v12 = vpop.permute.xlu1 %914 }
 0xd09   :  { %2335 = vmatmul.mubr.msk.f32.vlgmr.msra.gmra.mxu0 %vm85_vm0, %v915_v12  ;;  %v1128_v12 = vld [vmem:[#allocation2 + $0x180] sm:$0xff] }
 0xd0a   :  { %1316 = vmatprep.mubr.f32.mxu0 %v2574_v0  ;;  %1269 = vmatpush1.msra.mxu0 %v2945_v62 }
 0xd0b   :  { %1270 = vmatprep.subr.mxu0 %v2948_v41  ;;  %1192 = vmatpush1.msra.mxu1 %v1128_v12 }
 0xd0c   :  { %1271 = vmatpush1.msra.mxu0 %v2950_v31 }
 0xd0d   :  { %1272 = vmatprep.subr.mxu0 %v2953_v5 }
 0xdc9   :  { %v984_v14 = vpop.f32.mrf.mxu0 }
 0xdca   :  { %v991_v16 = vrot.slane %v984_v14, 2  ;;  %v1127_v14 = vld [vmem:[#allocation2 + $0x178] sm:$0xff] }
 0xdcb   :  { %v986_v18 = vpop.f32.mrf.mxu0  ;;  %1193 = vmatprep.subr.mxu1 %v1127_v14 }
 0xdcc   :  { %v995_v20 = vadd.f32 %v991_v16, %v2858_v50  ;;  %v992_v22 = vrot.slane %v986_v18, 2  ;;  %v1126_v16 = vld [vmem:[#allocation2 + $0x170] sm:$0xff]  ;;  %v1125_v18 = vld [vmem:[#allocation2 + $0x168] sm:$0xff] }
 0xdcd   :  { %1194 = vmatpush1.msra.mxu1 %v1126_v16 }
 0xdce   :  { %v997_v24 = vmul.f32 0.5, %v995_v20  ;;  %v996_v26 = vadd.f32 %v992_v22, %v2862_v52  ;;  %1195 = vmatprep.subr.mxu1 %v1125_v18 }
 0xdd0   :  { %2469 = vtanh.f32 %v997_v24  ;;  %v998_v28 = vmul.f32 0.5, %v996_v26  ;;  %v1124_v24 = vld [vmem:[#allocation2 + $0x160] sm:$0xff] }
 0xdd1   :  { %1196 = vmatpush1.msra.mxu1 %v1124_v24 }
 0xdd2   :  { %v1000_v30 = vsel %vm35_vm1, %v996_v26, %v998_v28  ;;  %v2958_v26 = vld [vmem:[#allocation2 + $0x260] sm:$0xff]  ;;  %v1123_v28 = vld [vmem:[#allocation2 + $0x158] sm:$0xff] }
 0xdd3   :  { %2471 = vtanh.f32 %v1000_v30  ;;  %1273 = vmatpush1.msra.mxu0 %v2958_v26  ;;  %v2961_v30 = vld [vmem:[#allocation2 + $0x258] sm:$0xff]  ;;  %1197 = vmatprep.subr.mxu1 %v1123_v28 }
 0xdd4   :  { %1274 = vmatprep.subr.mxu0 %v2961_v30 }
 0xddd   :  { %v2470_v32 = vpop.eup %2469 }
 0xdde   :  { %v1003_v23 = vmul.f32 0.5, %v2470_v32  ;;  %v1122_v32 = vld [vmem:[#allocation2 + $0x150] sm:$0xff] }
 0xddf   :  { %1198 = vmatpush1.msra.mxu1 %v1122_v32 }
 0xde0   :  { %v2472_v2 = vpop.eup %2471  ;;  %v1005_v34 = vadd.f32 0.5, %v1003_v23  ;;  %v2964_v23 = vld [vmem:[#allocation2 + $0x250] sm:$0xff] }
 0xde1   :  { %v1004_v37 = vmul.f32 0.5, %v2472_v2  ;;  %1275 = vmatpush1.msra.mxu0 %v2964_v23 }
 0xde2   :  { %v2925_v44 = vmul.f32 %v1010_v33, %v1005_v34  ;;  %v2967_v33 = vld [vmem:[#allocation2 + $0x248] sm:$0xff] }
 0xde3   :  { %v1006_v40 = vadd.f32 0.5, %v1004_v37  ;;  %1276 = vmatprep.subr.mxu0 %v2967_v33  ;;  %v2970_v37 = vld [vmem:[#allocation2 + $0x240] sm:$0xff] }
 0xde4   :  { %1277 = vmatpush1.msra.mxu0 %v2970_v37 }
 0xde5   :  { %v2929_v50 = vsel %vm35_vm1, %v2472_v2, %v1006_v40  ;;  %v1121_v2 = vld [vmem:[#allocation2 + $0x148] sm:$0xff]  ;;  %v2973_v40 = vld [vmem:[#allocation2 + $0x238] sm:$0xff] }
 0xde6   :  { %v1013_v52 = vmul.f32 %v2929_v50, %v1005_v34  ;;  %1199 = vmatprep.subr.mxu1 %v1121_v2  ;;  %v1120_v34 = vld [vmem:[#allocation2 + $0x140] sm:$0xff]  ;;  %1278 = vmatprep.subr.mxu0 %v2973_v40 }
 0xde7   :  { %1200 = vmatpush1.msra.mxu1 %v1120_v34 }
 0xde8   :  { %1015 = vrot.lane.b32.xlu0 %v1013_v52, %s2575_s20  ;;  %v1118_v52 = vld [vmem:[#allocation2 + $0x130] sm:$0xff] }
 0xdec   :  { %2398 = vrot.lane.b32.xlu0 %v2397_v43, %s2575_s20  ;;  %v2976_v43 = vld [vmem:[#allocation2 + $0x230] sm:$0xff] }
 0xded   :  { %1279 = vmatpush1.msra.mxu0 %v2976_v43 }
 0xdee   :  { %1280 = vmatprep.subr.mxu0 %v2979_v55 }
 0xdef   :  { %1281 = vmatpush1.msra.mxu0 %v2985_v59 }
 0xdf0   :  { %1059 = vrot.lane.b32.xlu0 %v1058_v51, %s2575_s20  ;;  %1282 = vmatprep.subr.mxu0 %v2988_v39 }
 0xdf1   :  { %1283 = vmatpush1.msra.mxu0 %v2990_v1 }
 0xdf2   :  { %1317 = vmatmul.mubr.f32.vlgmr.msra.gmra.mxu0 %v2574_v0  ;;  %1368 = vmatprep.subr.mxu0 %v2942_v29 }
 0xdf3   :  { %1369 = vmatpush1.msra.mxu0 %v2945_v62  ;;  %1416 = vmatprep.mubr.f32.mxu0 %v2574_v0 }
 0xdf4   :  { %1370 = vmatprep.subr.mxu0 %v2948_v41 }
 0xdf5   :  { %1371 = vmatpush1.msra.mxu0 %v2950_v31 }
 0xdf6   :  { %1372 = vmatprep.subr.mxu0 %v2953_v5 }
 0xdf7   :  { %1373 = vmatpush1.msra.mxu0 %v2958_v26 }
 0xdf8   :  { %1374 = vmatprep.subr.mxu0 %v2961_v30 }
 0xdf9   :  { %1375 = vmatpush1.msra.mxu0 %v2964_v23 }
 0xdfa   :  { %1376 = vmatprep.subr.mxu0 %v2967_v33 }
 0xdfb   :  { %1377 = vmatpush1.msra.mxu0 %v2970_v37 }
 0xdfc   :  { %1378 = vmatprep.subr.mxu0 %v2973_v40 }
 0xdfd   :  { %1379 = vmatpush1.msra.mxu0 %v2976_v43 }
 0xdfe   :  { %1380 = vmatprep.subr.mxu0 %v2979_v55 }
 0xdff   :  { %1381 = vmatpush1.msra.mxu0 %v2985_v59 }
 0xe00   :  { %1382 = vmatprep.subr.mxu0 %v2988_v39 }
 0xe01   :  { %1383 = vmatpush1.msra.mxu0 %v2990_v1 }
 0xe02   :  { %1590 = vmatprep.subr.mxu0 %v2942_v29 }
 0xe5a   :  { %v1016_v20 = vpop.permute.xlu0 %1015 }
 0xe5b   :  { %v1018_v22 = vadd.f32 %v1016_v20, %v2925_v44  ;;  %v1119_v44 = vld [vmem:[#allocation2 + $0x138] sm:$0xff] }
 0xe5c   :  { %1201 = vmatprep.subr.mxu1 %v1119_v44 }
 0xe5d   :  { %2473 = vtanh.f32 %v1018_v22  ;;  %1202 = vmatpush1.msra.mxu1 %v1118_v52 }
 0xe5e   :  { %1203 = vmatprep.subr.mxu1 %v1117_v54  ;;  %v2399_v17 = vpop.permute.xlu0 %2398 }
 0xe5f   :  { %1204 = vmatpush1.msra.mxu1 %v1116_v58  ;;  %v2400_v6 = vunpack.i.l.bf16 %v2399_v17  ;;  %v2401_v24 = vunpack.i.h.bf16 %v2399_v17 }
 0xe60   :  { %1205 = vmatprep.subr.mxu1 %v1115_v60 }
 0xe61   :  { %1206 = vmatpush1.msra.mxu1 %v1114_v61 }
 0xe62   :  { %1479 = vmatprep.subr.mxu1 %v2942_v29  ;;  %v1060_v2 = vpop.permute.xlu0 %1059 }
 0xe6a   :  { %v2474_v53 = vpop.eup %2473 }
 0xe6b   :  { %v2982_v57 = vmul.f32 %v2474_v53, %v2929_v50 }
 0xe6d   :  { %v1023_v3 = vrot.slane %v2982_v57, 6 }
 0xe6f   :  { %v2402_v50 = vpack.i.bf16 %v2772_v63, %v1023_v3 }
 0xe71   :  { %2403 = vrot.lane.b32.xlu1 %v2402_v50, %s2575_s20 }
 0xe75   :  { %2408 = vrot.lane.b32.xlu1 %v2407_v11, %s2575_s20 }
 0xeb2   :  { %v1318_v17 = vpop.f32.mrf.mxu0 }
 0xee3   :  { %v2404_v4 = vpop.permute.xlu1 %2403 }
 0xee4   :  { %v2406_v10 = vunpack.i.h.bf16 %v2404_v4  ;;  %v2405_v12 = vunpack.i.l.bf16 %v2404_v4 }
 0xee6   :  { %v1029_v14 = vsel %vm1028_vm2, %v2740_v27, %v2405_v12  ;;  %v1041_v16 = vsel %vm1028_vm2, %v2406_v10, %v2400_v6 }
 0xee7   :  { %v1030_v18 = vsel %vm85_vm0, %v1029_v14, %v1023_v3  ;;  %v1042_v20 = vsel %vm85_vm0, %v1041_v16, %v1036_v42  ;;  %v2409_v22 = vpop.permute.xlu1 %2408  ;;  %v1320_v14 = vpop.f32.mrf.mxu0 }
 0xee8   :  { %v2411_v28 = vunpack.i.h.bf16 %v2409_v22  ;;  %v2410_v32 = vunpack.i.l.bf16 %v2409_v22  ;;  %v1032_v34 = vsel %vm1031_vm3, %v1030_v18, %v2736_v25  ;;  %v1043_v27 = vsel %vm1031_vm3, %v1042_v20, %v2772_v63 }
 0xee9   :  { %v1106_v60 = vsel %vm1105_vm4, %v1032_v34, %v1043_v27 }
 0xeea   :  { %v1052_v44 = vsel %vm1028_vm2, %v2401_v24, %v2410_v32  ;;  %v1063_v52 = vsel %vm1028_vm2, %v2411_v28, %v1060_v2 }
 0xeeb   :  { %v1053_v42 = vsel %vm85_vm0, %v1052_v44, %v1047_v7  ;;  %v1064_v53 = vsel %vm85_vm0, %v1063_v52, %v1058_v51  ;;  %v1163_v51 = vld [vmem:[#allocation2 + $0x290] ss:$8 sm:$0x3] }
 0xeec   :  { %v1054_v54 = vsel %vm1031_vm3, %v1053_v42, %v2801_v56  ;;  %v1065_v58 = vsel %vm1031_vm3, %v1064_v53, %v2830_v46  ;;  %v3063_v50 = vrot.slane %v1163_v51, %v77_v36  ;;  %v3067_v7 = vrot.slane %v1163_v51, %v81_v38 }
 0xeed   :  { %v1108_v61 = vsel %vm1107_vm5, %v1106_v60, %v1054_v54  ;;  %v1075_v54 = vrot.slane %v2801_v56, 2  ;;  %v1097_v60 = vrot.slane %v2736_v25, 2 }
 0xeee   :  { %v1110_v3 = vsel %vm1109_vm6, %v1108_v61, %v1065_v58 }
 0xeef   :  { %1240 = vmatmul.mubr.f32.vlgmr.msra.gmra.mxu1 %v1110_v3  ;;  %v2412_v58 = vpack.i.bf16 %v1075_v54, %v2902_v48  ;;  %v2422_v61 = vpack.i.bf16 %v1097_v60, %v2982_v57 }
 0xef0   :  { %1245 = vmatprep.mubr.f32.mxu1 %v2574_v0  ;;  %1480 = vmatpush1.msra.mxu1 %v2945_v62 }
 0xef1   :  { %1481 = vmatprep.subr.mxu1 %v2948_v41 }
 0xef2   :  { %1482 = vmatpush1.msra.mxu1 %v2950_v31 }
 0xef3   :  { %1483 = vmatprep.subr.mxu1 %v2953_v5 }
 0xef4   :  { %1484 = vmatpush1.msra.mxu1 %v2958_v26 }
 0xef5   :  { %1485 = vmatprep.subr.mxu1 %v2961_v30 }
 0xef6   :  { %1486 = vmatpush1.msra.mxu1 %v2964_v23 }
 0xef7   :  { %1487 = vmatprep.subr.mxu1 %v2967_v33 }
 0xef8   :  { %1488 = vmatpush1.msra.mxu1 %v2970_v37 }
 0xef9   :  { %1489 = vmatprep.subr.mxu1 %v2973_v40 }
 0xefa   :  { %1490 = vmatpush1.msra.mxu1 %v2976_v43 }
 0xefb   :  { %1491 = vmatprep.subr.mxu1 %v2979_v55 }
 0xefc   :  { %1492 = vmatpush1.msra.mxu1 %v2985_v59 }
 0xefd   :  { %1493 = vmatprep.subr.mxu1 %v2988_v39 }
 0xefe   :  { %1494 = vmatpush1.msra.mxu1 %v2990_v1 }
 0xeff   :  { %1701 = vmatprep.subr.mxu1 %v2942_v29 }
 0xfaf   :  { %v1241_v11 = vpop.f32.mrf.mxu1 }
 0xfb0   :  { %v3070_v4 = vadd.f32 %v1241_v11, %v3063_v50 }
 0xfb1   :  { %v1243_v6 = vpop.f32.mrf.mxu1 }
 0xfb2   :  { %v1323_v10 = vadd.f32 %v1318_v17, %v3070_v4  ;;  %v3074_v12 = vadd.f32 %v1243_v6, %v3067_v7 }
 0xfb4   :  { %v1325_v16 = vmul.f32 0.5, %v1323_v10  ;;  %v1324_v36 = vadd.f32 %v1320_v14, %v3074_v12 }
 0xfb6   :  { %2475 = vtanh.f32 %v1325_v16  ;;  %v1326_v18 = vmul.f32 0.5, %v1324_v36 }
 0xfb8   :  { %v1328_v35 = vsel %vm35_vm1, %v1324_v36, %v1326_v18 }
 0xfb9   :  { %2477 = vtanh.f32 %v1328_v35 }
 0xfc3   :  { %v2476_v38 = vpop.eup %2475 }
 0xfc4   :  { %v1331_v22 = vmul.f32 0.5, %v2476_v38 }
 0xfc6   :  { %v2478_v20 = vpop.eup %2477  ;;  %v1333_v32 = vadd.f32 0.5, %v1331_v22 }
 0xfc7   :  { %v1332_v24 = vmul.f32 0.5, %v2478_v20 }
 0xfc8   :  { %v1337_v27 = vmul.f32 0.0, %v1333_v32 }
 0xfc9   :  { %v1334_v28 = vadd.f32 0.5, %v1332_v24 }
 0xfcb   :  { %v1336_v2 = vsel %vm35_vm1, %v2478_v20, %v1334_v28 }
 0xfcc   :  { %v1338_v34 = vmul.f32 %v1336_v2, %v1333_v32 }
 0xfce   :  { %1340 = vrot.lane.b32.xlu1 %v1338_v34, %s2575_s20 }
0x1040   :  { %v1341_v44 = vpop.permute.xlu1 %1340 }
0x1041   :  { %v1343_v52 = vadd.f32 %v1341_v44, %v1337_v27  ;;  %v1086_v27 = vrot.slane %v2772_v63, 6 }
0x1043   :  { %2479 = vtanh.f32 %v1343_v52  ;;  %v1444_v20 = vrot.slane %v1343_v52, 6  ;;  %v2417_v44 = vpack.i.bf16 %v1086_v27, %v2915_v8 }
0x1050   :  { %v2480_v42 = vpop.eup %2479 }
0x1051   :  { %v3082_v53 = vmul.f32 %v2480_v42, %v1336_v2 }
0x1053   :  { %1348 = vrot.lane.b32.xlu0 %v3082_v53, %s2575_s20 }
0x1057   :  { %2413 = vrot.lane.b32.xlu0 %v2412_v58, %s2575_s20 }
0x105b   :  { %2423 = vrot.lane.b32.xlu0 %v2422_v61, %s2575_s20 }
0x10c5   :  { %v1349_v3 = vpop.permute.xlu0 %1348 }
0x10c6   :  { %2336 = vmatmul.mubr.msk.f32.vlgmr.msra.gmra.mxu0 %vm85_vm0, %v1349_v3 }
0x10c7   :  { %1591 = vmatpush1.msra.mxu0 %v2945_v62  ;;  %1638 = vmatprep.mubr.f32.mxu0 %v2574_v0 }
0x10c8   :  { %1592 = vmatprep.subr.mxu0 %v2948_v41 }
0x10c9   :  { %1593 = vmatpush1.msra.mxu0 %v2950_v31  ;;  %v2414_v42 = vpop.permute.xlu0 %2413 }
0x10ca   :  { %1594 = vmatprep.subr.mxu0 %v2953_v5  ;;  %v2416_v58 = vunpack.i.h.bf16 %v2414_v42  ;;  %v2415_v61 = vunpack.i.l.bf16 %v2414_v42 }
0x10cb   :  { %1595 = vmatpush1.msra.mxu0 %v2958_v26 }
0x10cc   :  { %1596 = vmatprep.subr.mxu0 %v2961_v30  ;;  %v1080_v3 = vsel %vm1028_vm2, %v2415_v61, %v2416_v58 }
0x10cd   :  { %1597 = vmatpush1.msra.mxu0 %v2964_v23  ;;  %v2424_v52 = vpop.permute.xlu0 %2423  ;;  %v1081_v63 = vsel %vm85_vm0, %v1080_v3, %v1075_v54 }
0x10ce   :  { %1598 = vmatprep.subr.mxu0 %v2967_v33 }
0x10cf   :  { %1599 = vmatpush1.msra.mxu0 %v2970_v37 }
0x10d0   :  { %1600 = vmatprep.subr.mxu0 %v2973_v40 }
0x10d1   :  { %1601 = vmatpush1.msra.mxu0 %v2976_v43 }
0x10d2   :  { %1602 = vmatprep.subr.mxu0 %v2979_v55 }
0x10d3   :  { %1603 = vmatpush1.msra.mxu0 %v2985_v59 }
0x10d4   :  { %1604 = vmatprep.subr.mxu0 %v2988_v39 }
0x10d5   :  { %1605 = vmatpush1.msra.mxu0 %v2990_v1 }
0x10d6   :  { %1804 = vmatprep.subr.mxu0 %v2942_v29 }
0x1186   :  { %v1418_v56 = vpop.f32.mrf.mxu0 }
0x1187   :  { %v1425_v51 = vrot.slane %v1418_v56, 6  ;;  %v2426_v56 = vunpack.i.h.bf16 %v2424_v52 }
0x1188   :  { %v1420_v11 = vpop.f32.mrf.mxu0 }
0x1189   :  { %v1429_v17 = vadd.f32 %v1425_v51, %v3070_v4  ;;  %v1426_v6 = vrot.slane %v1420_v11, 6  ;;  %v2425_v51 = vunpack.i.l.bf16 %v2424_v52 }
0x118b   :  { %v1431_v10 = vmul.f32 0.5, %v1429_v17  ;;  %v1430_v14 = vadd.f32 %v1426_v6, %v3074_v12  ;;  %v1069_v6 = vsel %vm1028_vm2, %v2875_v21, %v2836_v49 }
0x118d   :  { %2481 = vtanh.f32 %v1431_v10  ;;  %v1432_v16 = vmul.f32 0.5, %v1430_v14  ;;  %v1102_v10 = vsel %vm1028_vm2, %v2425_v51, %v2426_v56 }
0x118e   :  { %v1103_v49 = vsel %vm85_vm0, %v1102_v10, %v1097_v60 }
0x118f   :  { %v1434_v36 = vsel %vm35_vm1, %v1430_v14, %v1432_v16  ;;  %v1070_v16 = vsel %vm85_vm0, %v1069_v6, %v593_v47 }
0x1190   :  { %2483 = vtanh.f32 %v1434_v36  ;;  %v1071_v21 = vsel %vm1031_vm3, %v1070_v16, %v2871_v19  ;;  %v1346_v19 = vmax.f32 %v3082_v53, 0.0 }
0x119a   :  { %v2482_v18 = vpop.eup %2481 }
0x119b   :  { %v1437_v35 = vmul.f32 0.5, %v2482_v18 }
0x119d   :  { %v2484_v38 = vpop.eup %2483  ;;  %v1439_v22 = vadd.f32 0.5, %v1437_v35  ;;  %v1082_v35 = vsel %vm1031_vm3, %v1081_v63, %v2902_v48 }
0x119e   :  { %v1438_v24 = vmul.f32 0.5, %v2484_v38  ;;  %v1111_v47 = vsel %vm1105_vm4, %v1071_v21, %v1082_v35 }
0x119f   :  { %v1446_v28 = vmul.f32 %v1444_v20, %v1439_v22  ;;  %v1104_v20 = vsel %vm1031_vm3, %v1103_v49, %v2982_v57 }
0x11a0   :  { %v1440_v32 = vadd.f32 0.5, %v1438_v24 }
0x11a2   :  { %v1442_v2 = vsel %vm35_vm1, %v2484_v38, %v1440_v32 }
0x11a3   :  { %v1447_v34 = vmul.f32 %v1442_v2, %v1439_v22 }
0x11a5   :  { %1449 = vrot.lane.b32.xlu1 %v1447_v34, %s2575_s20 }
0x11a9   :  { %2418 = vrot.lane.b32.xlu1 %v2417_v44, %s2575_s20 }
0x1217   :  { %v1450_v11 = vpop.permute.xlu1 %1449 }
0x1218   :  { %v3123_v17 = vadd.f32 %v1450_v11, %v1446_v28 }
0x121a   :  { %2485 = vtanh.f32 %v3123_v17  ;;  %v1555_v11 = vrot.slane %v3123_v17, 6 }
0x121b   :  { %v2419_v14 = vpop.permute.xlu1 %2418 }
0x121c   :  { %v2421_v36 = vunpack.i.h.bf16 %v2419_v14  ;;  %v2420_v18 = vunpack.i.l.bf16 %v2419_v14 }
0x121e   :  { %v1091_v38 = vsel %vm1028_vm2, %v2420_v18, %v2421_v36 }
0x121f   :  { %v1092_v54 = vsel %vm85_vm0, %v1091_v38, %v1086_v27 }
0x1220   :  { %v1093_v46 = vsel %vm1031_vm3, %v1092_v54, %v2915_v8 }
0x1221   :  { %v1112_v48 = vsel %vm1107_vm5, %v1111_v47, %v1093_v46 }
0x1222   :  { %v1113_v22 = vsel %vm1109_vm6, %v1112_v48, %v1104_v20 }
0x1223   :  { %1246 = vmatmul.mubr.f32.gmra.mxu1 %v1113_v22 }
0x1224   :  { %1527 = vmatprep.mubr.f32.mxu1 %v2574_v0 }
0x1227   :  { %v2486_v25 = vpop.eup %2485 }
0x1228   :  { %v1454_v60 = vmul.f32 %v2486_v25, %v1442_v2 }
0x122a   :  { %v1456_v24 = vrot.slane %v1454_v60, 2 }
0x122c   :  { %1459 = vrot.lane.b32.xlu1 %v1456_v24, %s2575_s20  ;;  %v1458_v8 = vmax.f32 %v1346_v19, %v1456_v24 }
0x129e   :  { %v1460_v28 = vpop.permute.xlu1 %1459 }
0x129f   :  { %2337 = vmatmul.mubr.msk.f32.vlgmr.msra.gmra.mxu1 %vm85_vm0, %v1460_v28 }
0x12a0   :  { %1702 = vmatpush1.msra.mxu1 %v2945_v62  ;;  %1749 = vmatprep.mubr.f32.mxu1 %v2574_v0 }
0x12a1   :  { %1703 = vmatprep.subr.mxu1 %v2948_v41 }
0x12a2   :  { %1704 = vmatpush1.msra.mxu1 %v2950_v31 }
0x12a3   :  { %1705 = vmatprep.subr.mxu1 %v2953_v5 }
0x12a4   :  { %1706 = vmatpush1.msra.mxu1 %v2958_v26 }
0x12a5   :  { %1707 = vmatprep.subr.mxu1 %v2961_v30 }
0x12a6   :  { %1708 = vmatpush1.msra.mxu1 %v2964_v23 }
0x12a7   :  { %1709 = vmatprep.subr.mxu1 %v2967_v33 }
0x12a8   :  { %1710 = vmatpush1.msra.mxu1 %v2970_v37 }
0x12a9   :  { %1711 = vmatprep.subr.mxu1 %v2973_v40 }
0x12aa   :  { %1712 = vmatpush1.msra.mxu1 %v2976_v43 }
0x12ab   :  { %1713 = vmatprep.subr.mxu1 %v2979_v55 }
0x12ac   :  { %1714 = vmatpush1.msra.mxu1 %v2985_v59 }
0x12ad   :  { %1715 = vmatprep.subr.mxu1 %v2988_v39 }
0x12ae   :  { %1716 = vmatpush1.msra.mxu1 %v2990_v1 }
0x12af   :  { %1915 = vmatprep.subr.mxu1 %v2942_v29 }
0x12e3   :  { %v3171_v57 = vpop.f32.mrf.mxu1 }
0x12e5   :  { %v3173_v53 = vpop.f32.mrf.mxu1 }
0x135f   :  { %v1529_v32 = vpop.f32.mrf.mxu1 }
0x1360   :  { %v1536_v2 = vrot.slane %v1529_v32, 4 }
0x1361   :  { %v1531_v34 = vpop.f32.mrf.mxu1 }
0x1362   :  { %v1540_v27 = vadd.f32 %v1536_v2, %v3070_v4  ;;  %v1537_v44 = vrot.slane %v1531_v34, 4 }
0x1364   :  { %v1542_v42 = vmul.f32 0.5, %v1540_v27  ;;  %v1541_v58 = vadd.f32 %v1537_v44, %v3074_v12 }
0x1366   :  { %2487 = vtanh.f32 %v1542_v42  ;;  %v1543_v61 = vmul.f32 0.5, %v1541_v58 }
0x1368   :  { %v1545_v52 = vsel %vm35_vm1, %v1541_v58, %v1543_v61 }
0x1369   :  { %2489 = vtanh.f32 %v1545_v52 }
0x1373   :  { %v2488_v3 = vpop.eup %2487 }
0x1374   :  { %v1548_v56 = vmul.f32 0.5, %v2488_v3 }
0x1376   :  { %v2490_v51 = vpop.eup %2489  ;;  %v1550_v6 = vadd.f32 0.5, %v1548_v56 }
0x1377   :  { %v1549_v63 = vmul.f32 0.5, %v2490_v51 }
0x1378   :  { %v1557_v10 = vmul.f32 %v1555_v11, %v1550_v6  ;;  %v3232_v11 = vadd.f32 %v3171_v57, %v3063_v50 }
0x1379   :  { %v1551_v14 = vadd.f32 0.5, %v1549_v63  ;;  %v3236_v63 = vadd.f32 %v3173_v53, %v3067_v7 }
0x137b   :  { %v1553_v16 = vsel %vm35_vm1, %v2490_v51, %v1551_v14 }
0x137c   :  { %v1558_v36 = vmul.f32 %v1553_v16, %v1550_v6 }
0x137e   :  { %1560 = vrot.lane.b32.xlu0 %v1558_v36, %s2575_s20 }
0x13f0   :  { %v1561_v18 = vpop.permute.xlu0 %1560 }
0x13f1   :  { %v1563_v35 = vadd.f32 %v1561_v18, %v1557_v10 }
0x13f3   :  { %2491 = vtanh.f32 %v1563_v35  ;;  %v1666_v2 = vrot.slane %v1563_v35, 6 }
0x1400   :  { %v2492_v38 = vpop.eup %2491 }
0x1401   :  { %v1565_v49 = vmul.f32 %v2492_v38, %v1553_v16 }
0x1403   :  { %v1567_v21 = vrot.slane %v1565_v49, 4 }
0x1405   :  { %1570 = vrot.lane.b32.xlu1 %v1567_v21, %s2575_s20  ;;  %v1569_v54 = vmax.f32 %v1458_v8, %v1567_v21 }
0x1477   :  { %v1571_v17 = vpop.permute.xlu1 %1570 }
0x1478   :  { %2338 = vmatmul.mubr.msk.f32.vlgmr.msra.gmra.mxu0 %vm85_vm0, %v1571_v17 }
0x1479   :  { %1805 = vmatpush1.msra.mxu0 %v2945_v62  ;;  %1852 = vmatprep.mubr.f32.mxu0 %v2574_v0 }
0x147a   :  { %1806 = vmatprep.subr.mxu0 %v2948_v41 }
0x147b   :  { %1807 = vmatpush1.msra.mxu0 %v2950_v31 }
0x147c   :  { %1808 = vmatprep.subr.mxu0 %v2953_v5 }
0x147d   :  { %1809 = vmatpush1.msra.mxu0 %v2958_v26 }
0x147e   :  { %1810 = vmatprep.subr.mxu0 %v2961_v30 }
0x147f   :  { %1811 = vmatpush1.msra.mxu0 %v2964_v23 }
0x1480   :  { %1812 = vmatprep.subr.mxu0 %v2967_v33 }
0x1481   :  { %1813 = vmatpush1.msra.mxu0 %v2970_v37 }
0x1482   :  { %1814 = vmatprep.subr.mxu0 %v2973_v40 }
0x1483   :  { %1815 = vmatpush1.msra.mxu0 %v2976_v43 }
0x1484   :  { %1816 = vmatprep.subr.mxu0 %v2979_v55 }
0x1485   :  { %1817 = vmatpush1.msra.mxu0 %v2985_v59 }
0x1486   :  { %1818 = vmatprep.subr.mxu0 %v2988_v39 }
0x1487   :  { %1819 = vmatpush1.msra.mxu0 %v2990_v1 }
0x1488   :  { %2026 = vmatprep.subr.mxu0 %v2942_v29 }
0x1538   :  { %v1640_v46 = vpop.f32.mrf.mxu0 }
0x1539   :  { %v1647_v47 = vrot.slane %v1640_v46, 2 }
0x153a   :  { %v1642_v20 = vpop.f32.mrf.mxu0 }
0x153b   :  { %v1651_v48 = vadd.f32 %v1647_v47, %v3070_v4  ;;  %v1648_v22 = vrot.slane %v1642_v20, 2 }
0x153d   :  { %v1653_v25 = vmul.f32 0.5, %v1651_v48  ;;  %v1652_v60 = vadd.f32 %v1648_v22, %v3074_v12 }
0x153f   :  { %2493 = vtanh.f32 %v1653_v25  ;;  %v1654_v19 = vmul.f32 0.5, %v1652_v60 }
0x1541   :  { %v1656_v24 = vsel %vm35_vm1, %v1652_v60, %v1654_v19 }
0x1542   :  { %2495 = vtanh.f32 %v1656_v24 }
0x154c   :  { %v2494_v8 = vpop.eup %2493 }
0x154d   :  { %v1659_v28 = vmul.f32 0.5, %v2494_v8 }
0x154f   :  { %v2496_v32 = vpop.eup %2495  ;;  %v1661_v29 = vadd.f32 0.5, %v1659_v28 }
0x1550   :  { %v1660_v34 = vmul.f32 0.5, %v2496_v32 }
0x1551   :  { %v1668_v27 = vmul.f32 %v1666_v2, %v1661_v29 }
0x1552   :  { %v1662_v44 = vadd.f32 0.5, %v1660_v34 }
0x1554   :  { %v1664_v4 = vsel %vm35_vm1, %v2496_v32, %v1662_v44 }
0x1555   :  { %v1669_v42 = vmul.f32 %v1664_v4, %v1661_v29 }
0x1557   :  { %1671 = vrot.lane.b32.xlu0 %v1669_v42, %s2575_s20 }
0x15c9   :  { %v1672_v12 = vpop.permute.xlu0 %1671 }
0x15ca   :  { %v1674_v58 = vadd.f32 %v1672_v12, %v1668_v27 }
0x15cc   :  { %2497 = vtanh.f32 %v1674_v58  ;;  %v1771_v49 = vrot.slane %v1674_v58, 6 }
0x15d9   :  { %v2498_v61 = vpop.eup %2497 }
0x15da   :  { %v1676_v52 = vmul.f32 %v2498_v61, %v1664_v4 }
0x15dc   :  { %v1678_v3 = vrot.slane %v1676_v52, 6 }
0x15de   :  { %1681 = vrot.lane.b32.xlu1 %v1678_v3, %s2575_s20  ;;  %v3210_v56 = vmax.f32 %v1569_v54, %v1678_v3 }
0x1650   :  { %v1682_v51 = vpop.permute.xlu1 %1681 }
0x1651   :  { %2339 = vmatmul.mubr.msk.f32.vlgmr.msra.gmra.mxu1 %vm85_vm0, %v1682_v51 }
0x1652   :  { %1916 = vmatpush1.msra.mxu1 %v2945_v62  ;;  %1963 = vmatprep.mubr.f32.mxu1 %v2574_v0 }
0x1653   :  { %1917 = vmatprep.subr.mxu1 %v2948_v41 }
0x1654   :  { %1918 = vmatpush1.msra.mxu1 %v2950_v31 }
0x1655   :  { %1919 = vmatprep.subr.mxu1 %v2953_v5 }
0x1656   :  { %1920 = vmatpush1.msra.mxu1 %v2958_v26 }
0x1657   :  { %1921 = vmatprep.subr.mxu1 %v2961_v30 }
0x1658   :  { %1922 = vmatpush1.msra.mxu1 %v2964_v23 }
0x1659   :  { %1923 = vmatprep.subr.mxu1 %v2967_v33 }
0x165a   :  { %1924 = vmatpush1.msra.mxu1 %v2970_v37 }
0x165b   :  { %1925 = vmatprep.subr.mxu1 %v2973_v40 }
0x165c   :  { %1926 = vmatpush1.msra.mxu1 %v2976_v43 }
0x165d   :  { %1927 = vmatprep.subr.mxu1 %v2979_v55 }
0x165e   :  { %1928 = vmatpush1.msra.mxu1 %v2985_v59 }
0x165f   :  { %1929 = vmatprep.subr.mxu1 %v2988_v39 }
0x1660   :  { %1930 = vmatpush1.msra.mxu1 %v2990_v1 }
0x1661   :  { %2360 = vmatprep.subr.mxu1 %v2574_v0 }
0x1711   :  { %v1751_v6 = vpop.f32.mrf.mxu1 }
0x1712   :  { %v1756_v10 = vadd.f32 %v1751_v6, %v3232_v11 }
0x1713   :  { %v1753_v14 = vpop.f32.mrf.mxu1 }
0x1714   :  { %v1758_v16 = vmul.f32 0.5, %v1756_v10  ;;  %v1757_v36 = vadd.f32 %v1753_v14, %v3236_v63 }
0x1716   :  { %2499 = vtanh.f32 %v1758_v16  ;;  %v1759_v18 = vmul.f32 0.5, %v1757_v36 }
0x1718   :  { %v1761_v35 = vsel %vm35_vm1, %v1757_v36, %v1759_v18 }
0x1719   :  { %2501 = vtanh.f32 %v1761_v35 }
0x1723   :  { %v2500_v38 = vpop.eup %2499 }
0x1724   :  { %v1764_v50 = vmul.f32 0.5, %v2500_v38 }
0x1726   :  { %v2502_v57 = vpop.eup %2501  ;;  %v1766_v21 = vadd.f32 0.5, %v1764_v50 }
0x1727   :  { %v1765_v54 = vmul.f32 0.5, %v2502_v57 }
0x1728   :  { %v1773_v7 = vmul.f32 %v1771_v49, %v1766_v21 }
0x1729   :  { %v1767_v53 = vadd.f32 0.5, %v1765_v54 }
0x172b   :  { %v1769_v17 = vsel %vm35_vm1, %v2502_v57, %v1767_v53 }
0x172c   :  { %v1774_v46 = vmul.f32 %v1769_v17, %v1766_v21 }
0x172e   :  { %1776 = vrot.lane.b32.xlu0 %v1774_v46, %s2575_s20 }
0x17a0   :  { %v1777_v47 = vpop.permute.xlu0 %1776 }
0x17a1   :  { %v1779_v20 = vadd.f32 %v1777_v47, %v1773_v7 }
0x17a3   :  { %2503 = vtanh.f32 %v1779_v20 }
0x17b0   :  { %v2504_v48 = vpop.eup %2503 }
0x17b1   :  { %v1781_v22 = vmul.f32 %v2504_v48, %v1769_v17 }
0x17b3   :  { %1784 = vrot.lane.b32.xlu1 %v1781_v22, %s2575_s20  ;;  %v1782_v25 = vmax.f32 %v3210_v56, %v1781_v22 }
0x1825   :  { %v1785_v60 = vpop.permute.xlu1 %1784 }
0x1826   :  { %2340 = vmatmul.mubr.msk.f32.vlgmr.msra.gmra.mxu0 %vm85_vm0, %v1785_v60 }
0x1827   :  { %2027 = vmatpush1.msra.mxu0 %v2945_v62  ;;  %2074 = vmatprep.mubr.f32.mxu0 %v2574_v0 }
0x1828   :  { %2028 = vmatprep.subr.mxu0 %v2948_v41 }
0x1829   :  { %2029 = vmatpush1.msra.mxu0 %v2950_v31 }
0x182a   :  { %2030 = vmatprep.subr.mxu0 %v2953_v5 }
0x182b   :  { %2031 = vmatpush1.msra.mxu0 %v2958_v26 }
0x182c   :  { %2032 = vmatprep.subr.mxu0 %v2961_v30 }
0x182d   :  { %2033 = vmatpush1.msra.mxu0 %v2964_v23 }
0x182e   :  { %2034 = vmatprep.subr.mxu0 %v2967_v33 }
0x182f   :  { %2035 = vmatpush1.msra.mxu0 %v2970_v37 }
0x1830   :  { %2036 = vmatprep.subr.mxu0 %v2973_v40 }
0x1831   :  { %2037 = vmatpush1.msra.mxu0 %v2976_v43 }
0x1832   :  { %2038 = vmatprep.subr.mxu0 %v2979_v55 }
0x1833   :  { %2039 = vmatpush1.msra.mxu0 %v2985_v59  ;;  %v1880_v59 = vrot.slane %v1779_v20, 6 }
0x1834   :  { %2040 = vmatprep.subr.mxu0 %v2988_v39 }
0x1835   :  { %2041 = vmatpush1.msra.mxu0 %v2990_v1 }
0x1836   :  { %2379 = vmatprep.subr.mxu0 %v2574_v0 }
0x18e6   :  { %v1854_v62 = vpop.f32.mrf.mxu0 }
0x18e7   :  { %v1861_v41 = vrot.slane %v1854_v62, 6 }
0x18e8   :  { %v1856_v31 = vpop.f32.mrf.mxu0 }
0x18e9   :  { %v1865_v5 = vadd.f32 %v1861_v41, %v3232_v11  ;;  %v1862_v26 = vrot.slane %v1856_v31, 6 }
0x18eb   :  { %v1867_v30 = vmul.f32 0.5, %v1865_v5  ;;  %v1866_v23 = vadd.f32 %v1862_v26, %v3236_v63 }
0x18ed   :  { %2505 = vtanh.f32 %v1867_v30  ;;  %v1868_v33 = vmul.f32 0.5, %v1866_v23 }
0x18ef   :  { %v1870_v37 = vsel %vm35_vm1, %v1866_v23, %v1868_v33 }
0x18f0   :  { %2507 = vtanh.f32 %v1870_v37 }
0x18fa   :  { %v2506_v40 = vpop.eup %2505 }
0x18fb   :  { %v1873_v43 = vmul.f32 0.5, %v2506_v40 }
0x18fd   :  { %v2508_v55 = vpop.eup %2507  ;;  %v1875_v39 = vadd.f32 0.5, %v1873_v43 }
0x18fe   :  { %v1874_v1 = vmul.f32 0.5, %v2508_v55 }
0x18ff   :  { %v1882_v19 = vmul.f32 %v1880_v59, %v1875_v39 }
0x1900   :  { %v1876_v24 = vadd.f32 0.5, %v1874_v1  ;;  %v2136_v1 = vld [vmem:[%s3360_s2 + $0x18] sm:$0xff] }
0x1902   :  { %v1878_v8 = vsel %vm35_vm1, %v2508_v55, %v1876_v24  ;;  %v2134_v24 = vld [vmem:[%s3360_s2 + $0x8] sm:$0xff] }
0x1903   :  { %v1883_v28 = vmul.f32 %v1878_v8, %v1875_v39  ;;  %v2143_v39 = vld [vmem:[%s3360_s2 + $0x50] sm:$0xff] }
0x1905   :  { %1885 = vrot.lane.b32.xlu0 %v1883_v28, %s2575_s20  ;;  %v2132_v28 = vmax.f32 %v2131_v15, 0.0  ;;  %v2137_v15 = vld [vmem:[%s3360_s2 + $0x20] sm:$0xff] }
0x1977   :  { %v1886_v32 = vpop.permute.xlu0 %1885 }
0x1978   :  { %v1888_v2 = vadd.f32 %v1886_v32, %v1882_v19  ;;  %v2135_v19 = vld [vmem:[%s3360_s2 + $0x10] sm:$0xff]  ;;  %v2133_v32 = vld [vmem:[%s3360_s2] sm:$0xff] }
0x197a   :  { %2509 = vtanh.f32 %v1888_v2  ;;  %v1991_v36 = vrot.slane %v1888_v2, 6  ;;  %v2140_v2 = vld [vmem:[%s3360_s2 + $0x38] sm:$0xff] }
0x1987   :  { %v2510_v29 = vpop.eup %2509 }
0x1988   :  { %v1890_v34 = vmul.f32 %v2510_v29, %v1878_v8  ;;  %v2141_v8 = vld [vmem:[%s3360_s2 + $0x40] sm:$0xff] }
0x198a   :  { %v1892_v27 = vrot.slane %v1890_v34, 2 }
0x198c   :  { %1895 = vrot.lane.b32.xlu1 %v1892_v27, %s2575_s20  ;;  %v1894_v44 = vmax.f32 %v1782_v25, %v1892_v27 }
0x19fe   :  { %v1896_v4 = vpop.permute.xlu1 %1895 }
0x19ff   :  { %2341 = vmatmul.mubr.msk.f32.vlgmr.msra.gmra.mxu1 %vm85_vm0, %v1896_v4 }
0x1a00   :  { %2376 = vmatprep.mubr.msk.f32.mxu1 %vm2576_vm7, %v2574_v0 }
0x1abf   :  { %v1965_v42 = vpop.f32.mrf.mxu1 }
0x1ac0   :  { %v1972_v12 = vrot.slane %v1965_v42, 4 }
0x1ac1   :  { %v1967_v58 = vpop.f32.mrf.mxu1 }
0x1ac2   :  { %v1976_v61 = vadd.f32 %v1972_v12, %v3232_v11  ;;  %v1973_v52 = vrot.slane %v1967_v58, 4 }
0x1ac4   :  { %v1978_v3 = vmul.f32 0.5, %v1976_v61  ;;  %v1977_v56 = vadd.f32 %v1973_v52, %v3236_v63 }
0x1ac6   :  { %2511 = vtanh.f32 %v1978_v3  ;;  %v1979_v51 = vmul.f32 0.5, %v1977_v56 }
0x1ac8   :  { %v1981_v6 = vsel %vm35_vm1, %v1977_v56, %v1979_v51 }
0x1ac9   :  { %2513 = vtanh.f32 %v1981_v6 }
0x1ad3   :  { %v2512_v10 = vpop.eup %2511 }
0x1ad4   :  { %v1984_v14 = vmul.f32 0.5, %v2512_v10 }
0x1ad6   :  { %v2514_v16 = vpop.eup %2513  ;;  %v1986_v18 = vadd.f32 0.5, %v1984_v14 }
0x1ad7   :  { %v1985_v35 = vmul.f32 0.5, %v2514_v16 }
0x1ad8   :  { %v1993_v38 = vmul.f32 %v1991_v36, %v1986_v18 }
0x1ad9   :  { %v1987_v50 = vadd.f32 0.5, %v1985_v35 }
0x1adb   :  { %v1989_v57 = vsel %vm35_vm1, %v2514_v16, %v1987_v50 }
0x1adc   :  { %v1994_v49 = vmul.f32 %v1989_v57, %v1986_v18 }
0x1ade   :  { %1996 = vrot.lane.b32.xlu0 %v1994_v49, %s2575_s20 }
0x1b50   :  { %v1997_v21 = vpop.permute.xlu0 %1996 }
0x1b51   :  { %v1999_v54 = vadd.f32 %v1997_v21, %v1993_v38 }
0x1b53   :  { %2515 = vtanh.f32 %v1999_v54  ;;  %v2102_v33 = vrot.slane %v1999_v54, 6 }
0x1b60   :  { %v2516_v7 = vpop.eup %2515 }
0x1b61   :  { %v2001_v53 = vmul.f32 %v2516_v7, %v1989_v57 }
0x1b63   :  { %v2003_v17 = vrot.slane %v2001_v53, 4 }
0x1b65   :  { %2006 = vrot.lane.b32.xlu1 %v2003_v17, %s2575_s20  ;;  %v3282_v46 = vmax.f32 %v1894_v44, %v2003_v17 }
0x1bd7   :  { %v2007_v47 = vpop.permute.xlu1 %2006 }
0x1bd8   :  { %2342 = vmatmul.mubr.msk.f32.vlgmr.msra.gmra.mxu0 %vm85_vm0, %v2007_v47 }
0x1bd9   :  { %2387 = vmatprep.mubr.msk.f32.mxu0 %vm2576_vm7, %v2574_v0  ;;  %2380 = vmatpush3.msra.mxu0 %v2136_v1 }
0x1bda   :  { %2381 = vmatprep.subr.mxu0 %v2574_v0 }
0x1bdb   :  { %2382 = vmatpush3.msra.mxu0 %v2135_v19 }
0x1bdc   :  { %2383 = vmatprep.subr.mxu0 %v2574_v0 }
0x1bdd   :  { %2384 = vmatpush3.msra.mxu0 %v2134_v24 }
0x1bde   :  { %2385 = vmatprep.subr.mxu0 %v2574_v0 }
0x1bdf   :  { %2386 = vmatpush3.msra.mxu0 %v2133_v32 }
0x1be0   :  { %2388 = vmatmul.mubr.msk.f32.vlgmr.msra.gmra.mxu0 %vm1028_vm2, %v2132_v28 }
0x1c98   :  { %v2076_v20 = vpop.f32.mrf.mxu0 }
0x1c99   :  { %v2083_v48 = vrot.slane %v2076_v20, 2 }
0x1c9a   :  { %v2078_v22 = vpop.f32.mrf.mxu0 }
0x1c9b   :  { %v2087_v25 = vadd.f32 %v2083_v48, %v3232_v11  ;;  %v2084_v60 = vrot.slane %v2078_v22, 2 }
0x1c9d   :  { %v2089_v62 = vmul.f32 0.5, %v2087_v25  ;;  %v2088_v41 = vadd.f32 %v2084_v60, %v3236_v63  ;;  %v2144_v63 = vld [vmem:[%s3360_s2 + $0x58] sm:$0xff] }
0x1c9e   :  { %2361 = vmatpush3.msra.mxu1 %v2144_v63 }
0x1c9f   :  { %2517 = vtanh.f32 %v2089_v62  ;;  %v2090_v31 = vmul.f32 0.5, %v2088_v41  ;;  %2362 = vmatprep.subr.mxu1 %v2574_v0 }
0x1ca0   :  { %2363 = vmatpush3.msra.mxu1 %v2143_v39  ;;  %v2290_v12 = vpop.f32.mrf.mxu0 }
0x1ca1   :  { %v2092_v5 = vsel %vm35_vm1, %v2088_v41, %v2090_v31  ;;  %2364 = vmatprep.subr.mxu1 %v2574_v0 }
0x1ca2   :  { %2519 = vtanh.f32 %v2092_v5  ;;  %2365 = vmatpush3.msra.mxu1 %v2142_v45  ;;  %v2389_v58 = vpop.f32.mrf.mxu0 }
0x1ca3   :  { %2366 = vmatprep.subr.mxu1 %v2574_v0 }
0x1ca4   :  { %2367 = vmatpush3.msra.mxu1 %v2141_v8 }
0x1ca5   :  { %2368 = vmatprep.subr.mxu1 %v2574_v0 }
0x1ca6   :  { %2369 = vmatpush3.msra.mxu1 %v2140_v2 }
0x1ca7   :  { %2370 = vmatprep.subr.mxu1 %v2574_v0 }
0x1ca8   :  { %2371 = vmatpush3.msra.mxu1 %v2139_v9 }
0x1ca9   :  { %2372 = vmatprep.subr.mxu1 %v2574_v0 }
0x1caa   :  { %2373 = vmatpush3.msra.mxu1 %v2138_v13 }
0x1cab   :  { %2374 = vmatprep.subr.mxu1 %v2574_v0  ;;  %v2345_v0 = vld [vmem:[%s3360_s2 + $0x60] ss:$0 sm:$0xff] }
0x1cac   :  { %v2518_v26 = vpop.eup %2517  ;;  %2375 = vmatpush3.msra.mxu1 %v2137_v15 }
0x1cad   :  { %v2095_v30 = vmul.f32 0.5, %v2518_v26 }
0x1caf   :  { %v2520_v23 = vpop.eup %2519  ;;  %v2097_v37 = vadd.f32 0.5, %v2095_v30 }
0x1cb0   :  { %v2096_v40 = vmul.f32 0.5, %v2520_v23 }
0x1cb1   :  { %v2104_v43 = vmul.f32 %v2102_v33, %v2097_v37 }
0x1cb2   :  { %v2098_v55 = vadd.f32 0.5, %v2096_v40 }
0x1cb4   :  { %v2100_v11 = vsel %vm35_vm1, %v2520_v23, %v2098_v55 }
0x1cb5   :  { %v2105_v59 = vmul.f32 %v2100_v11, %v2097_v37 }
0x1cb7   :  { %2107 = vrot.lane.b32.xlu0 %v2105_v59, %s2575_s20 }
0x1d29   :  { %v2108_v29 = vpop.permute.xlu0 %2107 }
0x1d2a   :  { %v2110_v34 = vadd.f32 %v2108_v29, %v2104_v43 }
0x1d2c   :  { %2521 = vtanh.f32 %v2110_v34 }
0x1d39   :  { %v2522_v27 = vpop.eup %2521 }
0x1d3a   :  { %v2112_v44 = vmul.f32 %v2522_v27, %v2100_v11 }
0x1d3c   :  { %v2114_v4 = vrot.slane %v2112_v44, 6 }
0x1d3e   :  { %v2116_v42 = vmax.f32 %v3282_v46, %v2114_v4 }
0x1d40   :  { %2147 = vrot.lane.b32.xlu1 %v2116_v42, %s2575_s20  ;;  %s2577_s20 = smov [#allocation5]  }
0x1d41   :  { %s2318_s21 = sshll.u32 %s2577_s20, 4  ;;  %s2319_s21 = int_to_ptr.vmem [resolvable:$true] %s2318_s21 }
0x1d42   :  { %s2547_s2 = scalar_lea.vmem %s2319_s21, 32  ;;  %p2552_p6 = scmp.lt.s32.totalorder %s2319_s21, %s2319_s21 }
0x1d43   :  { %p2548_p5 = scmp.ne.s32.totalorder %s2319_s21, %s2547_s2  ;;  %p2553_p7 = scmp.lt.s32.totalorder %s2547_s2, %s2547_s2 }
0x1d45   :  { %p2554_p8 = por %p2553_p7, %p2552_p6 }
0x1d47   :  { %p2555_p9 = pnand %p2554_p8, %p2548_p5 }
0x1db2   :  { %v2148_v61 = vpop.permute.xlu1 %2147 }
0x1db3   :  { %2377 = vmatmul.mubr.msk.f32.vlgmr.msra.gmra.mxu1 %vm85_vm0, %v2148_v61 }
0x1e73   :  { %v2217_v52 = vpop.f32.mrf.mxu1 }
0x1e74   :  { %v2291_v3 = vadd.f32 %v2290_v12, %v2217_v52 }
0x1e75   :  { %v2378_v56 = vpop.f32.mrf.mxu1 }
0x1e76   :  { %v2298_v51 = vadd.f32 %v2345_v0, %v2291_v3 }
0x1e78   :  { %v2300_v6 = vsel %vm2299_vm8, %v2298_v51, -inf }
0x1e79   :  { %2301 = vmax.xlane.f32.xlu0 %v2300_v6 }
0x1f02   :  { %v2302_v10 = vpop.xlane.xlu0 %2301 }
0x1f03   :  { %v2303_v14 = vsub.f32 %v2298_v51, %v2302_v10 }
0x1f05   :  { %v2304_v16 = vmul.f32 1.442695, %v2303_v14 }
0x1f07   :  { %2523 = vpow2.f32 %v2304_v16 }
0x1f14   :  { %v2524_v36 = vpop.eup %2523 }
0x1f15   :  { %v2306_v18 = vsel %vm2299_vm8, %v2524_v36, 0.0 }
0x1f16   :  { %2307 = vadd.xlane.f32.xlu1 %v2306_v18 }
0x1f9f   :  { %v2308_v35 = vpop.xlane.xlu1 %2307 }
0x1fa0   :  { %2525 = vrcp.f32 %v2308_v35 }
0x1fad   :  { %v2526_v38 = vpop.eup %2525 }
0x1fae   :  { %v2310_v50 = vmul.f32 %v2526_v38, %v2524_v36 }
0x1fb0   :  { %2311 = vst.msk [vmem:[#allocation5] sm:$0x3] %vm2299_vm8, %v2310_v50 }
0x1fb1   :  { %2558 = shalt.err (!%p2555_p9)
}
0x1fb2   :  { %2321 = dma.vmem_to_hbm [thread:$0]  %s2319_s21, 32, %s3361_s3, [#allocation4]  }
0x1fb3   :  { %2569 = dma.done.wait [#allocation4], 32  }
0x1fb4   :  { %2570 = vsyncadd [#allocation4], 4294967264 }
0x1fb5   :  { %2325 = vsyncpa [#allocation3], 1 }
0x1fb6   :  { %2326 = vsyncpa [#allocation4], 1 }

</bundles_post_ra>
